<compile_context>
chip_gen: v5e
topology: v5e:2x2
jax: 0.10.0
libtpu: 0.0.40
codegen_flags: <defaults>
</compile_context>

<pallas_src>
import math
import functools

import jax
import jax.numpy as jnp
from jax.experimental import pallas as pl
from jax.experimental.pallas import tpu as pltpu


def _round_up(x, m):
    return (x + m - 1) // m * m


def _vmem_budget_bytes():
    """Generation-aware VMEM budget: <= 3/4 of physical VMEM, capped at 100 MiB.

    v7x (64 MiB physical) -> 48 MiB; v5e/v6e (128 MiB) -> 96 MiB; unknown -> 48 MiB.
    """
    try:
        cap = int(pltpu.get_tpu_info().vmem_capacity_bytes)
    except Exception:
        cap = 64 * 1024 * 1024
    return min(cap * 3 // 4, 100 * 1024 * 1024)


def _resblock_kernel(x_ref, halo_ref, w1_ref, b1_ref, w2_ref, b2_ref, out_ref,
                     win_ref, *, K, P, TL, L, res_scale, neg_slope):
    # x_ref    : (1, TL, GC)       f32  current length tile (also the residual)
    # halo_ref : (1, 1, 4P, GC)    f32  [left 2P | right 2P] halo rows (zeroed OOB)
    # w1_ref   : (K, GC, GC)       bf16 per-tap conv1 weights (block-diag over lanes)
    # b1_ref   : (1, GC)           f32
    # w2_ref   : (K, GC, GC)       bf16 per-tap conv2 weights
    # b2_ref   : (1, GC)           f32
    # out_ref  : (1, TL, GC)       f32
    # win_ref  : (TL + 4P, GC)     bf16 VMEM scratch: padded input window
    t = pl.program_id(1)
    TLe = TL + 2 * P                       # hidden rows incl. conv2 halo
    halo = halo_ref[0, 0]                  # (4P, GC) f32 (tiny)

    # Padded window covering global positions [t*TL - 2P, t*TL + TL + 2P),
    # written with three aligned slice stores (no concatenate temporaries).
    win_ref[pl.ds(0, 2 * P), :] = halo[:2 * P].astype(jnp.bfloat16)
    win_ref[pl.ds(2 * P, TL), :] = x_ref[0].astype(jnp.bfloat16)
    win_ref[pl.ds(2 * P + TL, 2 * P), :] = halo[2 * P:].astype(jnp.bfloat16)

    # ---- Conv1d #1: K accumulating full-lane-width dots (no im2col temp) ----
    h = jnp.dot(win_ref[pl.ds(0, TLe), :], w1_ref[0],
                preferred_element_type=jnp.float32)
    for k in range(1, K):
        h = h + jnp.dot(win_ref[pl.ds(k, TLe), :], w1_ref[k],
                        preferred_element_type=jnp.float32)
    h = h + b1_ref[...]
    h = jnp.where(h >= 0, h, neg_slope * h)                    # LeakyReLU(0.2)

    # Conv2's zero padding acts on the *hidden* signal: zero any hidden row
    # whose global position falls outside [0, L).
    g = t * TL - P + jax.lax.broadcasted_iota(jnp.int32, (TLe, 1), 0)
    h = jnp.where((g >= 0) & (g < L), h, 0.0)
    hb = h.astype(jnp.bfloat16)

    # ---- Conv1d #2: K accumulating full-lane-width dots ----
    y = jnp.dot(hb[0:TL], w2_ref[0], preferred_element_type=jnp.float32)
    for k in range(1, K):
        y = y + jnp.dot(hb[k:k + TL], w2_ref[k],
                        preferred_element_type=jnp.float32)
    y = y + b2_ref[...]

    # ---- residual: res * res_scale + x ----
    out_ref[0] = (res_scale * y + x_ref[0]).astype(out_ref.dtype)


def residual_block(x_ncl, w1, b1, w2, b2, *, res_scale=0.1, neg_slope=0.2,
                   tile_len=2048):
    """x_ncl: (B, C, L) float32; w*: (C_out, C_in, K); b*: (C_out,)."""
    B, C, L = x_ncl.shape
    K = w1.shape[2]
    P = math.ceil((K - 1) / 2)
    # TODO(synk): even K changes the output length under PyTorch's padding rule;
    # only the module's odd-K ("same"-length) configuration is implemented.
    assert K == 2 * P + 1, "only odd kernel sizes supported"

    # Lane packing: put G batch elements on the lane axis (last dim -> G*C).
    # Note: on v7x with very short sequences one may prefer a smaller G so the
    # batch grid axis can feed the second TensorCore.
    G = max(1, min(B, 128 // C)) if C <= 128 else 1
    Bp = _round_up(B, G)
    Bg = Bp // G
    GC = G * C

    # Length tiling, capped by the generation-aware VMEM budget
    # (~40*GC bytes/row across double-buffered tiles, scratch and temps).
    vmem_limit = _vmem_budget_bytes()
    max_tl = max(256, ((vmem_limit // 2) // (40 * GC)) // 8 * 8)
    TL = _round_up(max(8, min(tile_len, max_tl, _round_up(L, 8))), 8)
    Lt = _round_up(L, TL)
    nT = Lt // TL

    # (B, C, L) -> (B, L, C); pad batch/length; pack G batches onto lanes.
    x_blc = jnp.transpose(x_ncl, (0, 2, 1))
    x_blc = jnp.pad(x_blc, ((0, Bp - B), (0, Lt - L), (0, 0)))
    x_pk = (x_blc.reshape(Bg, G, Lt, C).transpose(0, 2, 1, 3)
            .reshape(Bg, Lt, GC))

    # Per-tile halo rows at global positions [t*TL-2P, t*TL) and
    # [t*TL+TL, t*TL+TL+2P): gathered directly with clamped indices + mask
    # (rows in [L, Lt) are already zero from the length pad) -- no full-array
    # padded copy of the input.
    off = jnp.concatenate([jnp.arange(2 * P) - 2 * P, jnp.arange(2 * P) + TL])
    pos = jnp.arange(nT)[:, None] * TL + off[None, :]          # (nT, 4P)
    valid = (pos >= 0) & (pos < Lt)
    halo = jnp.where(valid[None, :, :, None],
                     x_pk[:, jnp.clip(pos, 0, Lt - 1), :],
                     0.0)                                      # (Bg, nT, 4P, GC)

    # Weights: (Cout, Cin, K) -> per-tap (Cin -> Cout), block-diagonal over the
    # G packed batches: (K, GC, GC), bf16.
    eye = jnp.eye(G, dtype=w1.dtype)

    def prep_w(w):
        wt = jnp.transpose(w, (2, 1, 0))                       # (K, Cin, Cout)
        return (jnp.einsum("gh,kio->kgiho", eye, wt)
                .reshape(K, GC, GC).astype(jnp.bfloat16))

    w1i, w2i = prep_w(w1), prep_w(w2)
    b1p = jnp.tile(b1, G).reshape(1, GC).astype(jnp.float32)
    b2p = jnp.tile(b2, G).reshape(1, GC).astype(jnp.float32)

    kernel = functools.partial(_resblock_kernel, K=K, P=P, TL=TL, L=L,
                               res_scale=res_scale, neg_slope=neg_slope)

    const2 = lambda b, t: (0, 0)
    const3 = lambda b, t: (0, 0, 0)
    out = pl.pallas_call(
        kernel,
        out_shape=jax.ShapeDtypeStruct((Bg, Lt, GC), x_ncl.dtype),
        grid_spec=pltpu.PrefetchScalarGridSpec(
            num_scalar_prefetch=0,
            grid=(Bg, nT),
            in_specs=[
                pl.BlockSpec((1, TL, GC), lambda b, t: (b, t, 0)),           # x tile
                pl.BlockSpec((1, 1, 4 * P, GC), lambda b, t: (b, t, 0, 0)),  # halo
                pl.BlockSpec((K, GC, GC), const3),                           # w1
                pl.BlockSpec((1, GC), const2),                               # b1
                pl.BlockSpec((K, GC, GC), const3),                           # w2
                pl.BlockSpec((1, GC), const2),                               # b2
            ],
            out_specs=pl.BlockSpec((1, TL, GC), lambda b, t: (b, t, 0)),
            scratch_shapes=[pltpu.VMEM((TL + 4 * P, GC), jnp.bfloat16)],
        ),
        compiler_params=pltpu.CompilerParams(
            dimension_semantics=("parallel", "parallel"),
            vmem_limit_bytes=vmem_limit),
    )(x_pk, halo, w1i, b1p, w2i, b2p)

    # Unpack lanes -> batch, strip padding, back to (B, C, L).
    out = (out[:, :L, :].reshape(Bg, L, G, C).transpose(0, 2, 1, 3)
           .reshape(Bp, L, C))[:B]
    return jnp.transpose(out, (0, 2, 1))


def _reference(x_ncl, w1, b1, w2, b2, *, res_scale=0.1, neg_slope=0.2):
    """Pure-JAX f32 reference matching torch.nn.Conv1d semantics."""
    P = math.ceil((w1.shape[2] - 1) / 2)

    def conv1d(x, w, b):
        y = jax.lax.conv_general_dilated(
            x, w, window_strides=(1,), padding=[(P, P)],
            dimension_numbers=("NCH", "OIH", "NCH"))
        return y + b[None, :, None]

    h = conv1d(x_ncl, w1, b1)
    h = jnp.where(h >= 0, h, neg_slope * h)
    h = conv1d(h, w2, b2)
    return h * res_scale + x_ncl


if __name__ == "__main__":
    # Module-consistent small shapes: batch=2, num_features=64, length=128, K=9.
    B, C, L, K = 2, 64, 128, 9
    key = jax.random.PRNGKey(0)
    kx, k1, k2, k3, k4 = jax.random.split(key, 5)

    bound = 1.0 / math.sqrt(C * K)
    x = jax.random.normal(kx, (B, C, L), dtype=jnp.float32)
    w1 = jax.random.uniform(k1, (C, C, K), jnp.float32, -bound, bound)
    b1 = jax.random.uniform(k2, (C,), jnp.float32, -bound, bound)
    w2 = jax.random.uniform(k3, (C, C, K), jnp.float32, -bound, bound)
    b2 = jax.random.uniform(k4, (C,), jnp.float32, -bound, bound)

    ref = _reference(x, w1, b1, w2, b2, res_scale=0.1)

    # tile_len=64 -> grid (1, 2): exercises length tiling, halo gather and
    # boundary masking.  Default tile_len -> single-tile path.
    for tl in (64, 2048):
        out = residual_block(x, w1, b1, w2, b2, res_scale=0.1, tile_len=tl)
        out = jax.block_until_ready(out)
        assert out.shape == (B, C, L)
        max_err = float(jnp.max(jnp.abs(out - ref)))
        # bf16 MXU operands with f32 accumulation -> loosened tolerance vs f32 ref.
        assert jnp.allclose(out, ref, atol=1e-2, rtol=1e-2), (tl, max_err)
    print("KERNEL_OK")
</pallas_src>

<mosaic_0001>
module attributes {stable_mosaic.version = 11 : i64} {
  func.func @_resblock_kernel(%arg0: i32, %arg1: i32, %arg2: memref<1x64x128xf32, #tpu.memory_space<vmem>>, %arg3: memref<1x1x16x128xf32, #tpu.memory_space<vmem>>, %arg4: memref<9x128x128xbf16, #tpu.memory_space<vmem>>, %arg5: memref<1x128xf32, #tpu.memory_space<vmem>>, %arg6: memref<9x128x128xbf16, #tpu.memory_space<vmem>>, %arg7: memref<1x128xf32, #tpu.memory_space<vmem>>, %arg8: memref<1x64x128xf32, #tpu.memory_space<vmem>>, %arg9: memref<80x128xbf16, #tpu.memory_space<vmem>>) attributes {dimension_semantics = [#tpu.dimension_semantics<parallel>, #tpu.dimension_semantics<parallel>], iteration_bounds = array<i64: 1, 2>, scalar_prefetch = 0 : i64, scratch_operands = 1 : i64, tpu.core_type = #tpu.core_type<tc>, window_params = [{transform_indices = @transform_0, window_bounds = array<i64: 1, 64, 128>}, {transform_indices = @transform_1, window_bounds = array<i64: 1, 1, 16, 128>}, {pipeline_mode = #tpu.pipeline_mode<synchronous>, transform_indices = @transform_2, window_bounds = array<i64: 9, 128, 128>}, {pipeline_mode = #tpu.pipeline_mode<synchronous>, transform_indices = @transform_3, window_bounds = array<i64: 1, 128>}, {pipeline_mode = #tpu.pipeline_mode<synchronous>, transform_indices = @transform_4, window_bounds = array<i64: 9, 128, 128>}, {pipeline_mode = #tpu.pipeline_mode<synchronous>, transform_indices = @transform_5, window_bounds = array<i64: 1, 128>}, {transform_indices = @transform_6, window_bounds = array<i64: 1, 64, 128>}]} {
    %c0 = arith.constant 0 : index
    %c0_0 = arith.constant 0 : index
    %c0_1 = arith.constant 0 : index
    %c0_2 = arith.constant 0 : index
    %0 = vector.load %arg3[%c0, %c0_0, %c0_1, %c0_2] : memref<1x1x16x128xf32, #tpu.memory_space<vmem>>, vector<1x1x16x128xf32>
    %1 = vector.shape_cast %0 : vector<1x1x16x128xf32> to vector<16x128xf32>
    %2 = vector.extract_strided_slice %1 {offsets = [0, 0], sizes = [8, 128], strides = [1, 1]} : vector<16x128xf32> to vector<8x128xf32>
    %3 = arith.truncf %2 : vector<8x128xf32> to vector<8x128xbf16>
    %c0_3 = arith.constant 0 : index
    %c0_4 = arith.constant 0 : index
    %4 = vector.load %arg9[%c0_3, %c0_4] : memref<80x128xbf16, #tpu.memory_space<vmem>>, vector<8x128xbf16>
    tpu.vector_store %arg9[%c0_3, %c0_4], %3 {strides = array<i32>} : memref<80x128xbf16, #tpu.memory_space<vmem>>, vector<8x128xbf16>,
    %c0_5 = arith.constant 0 : index
    %c0_6 = arith.constant 0 : index
    %c0_7 = arith.constant 0 : index
    %5 = vector.load %arg2[%c0_5, %c0_6, %c0_7] : memref<1x64x128xf32, #tpu.memory_space<vmem>>, vector<1x64x128xf32>
    %6 = vector.shape_cast %5 : vector<1x64x128xf32> to vector<64x128xf32>
    %7 = arith.truncf %6 : vector<64x128xf32> to vector<64x128xbf16>
    %c8 = arith.constant 8 : index
    %c0_8 = arith.constant 0 : index
    %8 = vector.load %arg9[%c8, %c0_8] : memref<80x128xbf16, #tpu.memory_space<vmem>>, vector<64x128xbf16>
    tpu.vector_store %arg9[%c8, %c0_8], %7 {strides = array<i32>} : memref<80x128xbf16, #tpu.memory_space<vmem>>, vector<64x128xbf16>,
    %9 = vector.extract_strided_slice %1 {offsets = [8, 0], sizes = [8, 128], strides = [1, 1]} : vector<16x128xf32> to vector<8x128xf32>
    %10 = arith.truncf %9 : vector<8x128xf32> to vector<8x128xbf16>
    %c72 = arith.constant 72 : index
    %c0_9 = arith.constant 0 : index
    %11 = vector.load %arg9[%c72, %c0_9] : memref<80x128xbf16, #tpu.memory_space<vmem>>, vector<8x128xbf16>
    tpu.vector_store %arg9[%c72, %c0_9], %10 {strides = array<i32>} : memref<80x128xbf16, #tpu.memory_space<vmem>>, vector<8x128xbf16>,
    %c0_10 = arith.constant 0 : index
    %c0_11 = arith.constant 0 : index
    %12 = vector.load %arg9[%c0_10, %c0_11] : memref<80x128xbf16, #tpu.memory_space<vmem>>, vector<72x128xbf16>
    %c0_12 = arith.constant 0 : index
    %c0_13 = arith.constant 0 : index
    %c0_14 = arith.constant 0 : index
    %13 = vector.load %arg4[%c0_12, %c0_13, %c0_14] : memref<9x128x128xbf16, #tpu.memory_space<vmem>>, vector<1x128x128xbf16>
    %14 = vector.shape_cast %13 : vector<1x128x128xbf16> to vector<128x128xbf16>
    %cst = arith.constant dense<0.000000e+00> : vector<72x128xf32>
    %15 = tpu.matmul %12, %14, %cst {dimension_numbers = #tpu.dot_dimension_numbers<[1], [0], [0], [1], [0, 0, 1, 1], [], []>} : vector<72x128xbf16>, vector<128x128xbf16>, vector<72x128xf32> -> vector<72x128xf32>
    %c1 = arith.constant 1 : index
    %c0_15 = arith.constant 0 : index
    %16 = vector.load %arg9[%c1, %c0_15] : memref<80x128xbf16, #tpu.memory_space<vmem>>, vector<72x128xbf16>
    %c1_16 = arith.constant 1 : index
    %c0_17 = arith.constant 0 : index
    %c0_18 = arith.constant 0 : index
    %17 = vector.load %arg4[%c1_16, %c0_17, %c0_18] : memref<9x128x128xbf16, #tpu.memory_space<vmem>>, vector<1x128x128xbf16>
    %18 = vector.shape_cast %17 : vector<1x128x128xbf16> to vector<128x128xbf16>
    %cst_19 = arith.constant dense<0.000000e+00> : vector<72x128xf32>
    %19 = tpu.matmul %16, %18, %cst_19 {dimension_numbers = #tpu.dot_dimension_numbers<[1], [0], [0], [1], [0, 0, 1, 1], [], []>} : vector<72x128xbf16>, vector<128x128xbf16>, vector<72x128xf32> -> vector<72x128xf32>
    %20 = arith.addf %15, %19 : vector<72x128xf32>
    %c2 = arith.constant 2 : index
    %c0_20 = arith.constant 0 : index
    %21 = vector.load %arg9[%c2, %c0_20] : memref<80x128xbf16, #tpu.memory_space<vmem>>, vector<72x128xbf16>
    %c2_21 = arith.constant 2 : index
    %c0_22 = arith.constant 0 : index
    %c0_23 = arith.constant 0 : index
    %22 = vector.load %arg4[%c2_21, %c0_22, %c0_23] : memref<9x128x128xbf16, #tpu.memory_space<vmem>>, vector<1x128x128xbf16>
    %23 = vector.shape_cast %22 : vector<1x128x128xbf16> to vector<128x128xbf16>
    %cst_24 = arith.constant dense<0.000000e+00> : vector<72x128xf32>
    %24 = tpu.matmul %21, %23, %cst_24 {dimension_numbers = #tpu.dot_dimension_numbers<[1], [0], [0], [1], [0, 0, 1, 1], [], []>} : vector<72x128xbf16>, vector<128x128xbf16>, vector<72x128xf32> -> vector<72x128xf32>
    %25 = arith.addf %20, %24 : vector<72x128xf32>
    %c3 = arith.constant 3 : index
    %c0_25 = arith.constant 0 : index
    %26 = vector.load %arg9[%c3, %c0_25] : memref<80x128xbf16, #tpu.memory_space<vmem>>, vector<72x128xbf16>
    %c3_26 = arith.constant 3 : index
    %c0_27 = arith.constant 0 : index
    %c0_28 = arith.constant 0 : index
    %27 = vector.load %arg4[%c3_26, %c0_27, %c0_28] : memref<9x128x128xbf16, #tpu.memory_space<vmem>>, vector<1x128x128xbf16>
    %28 = vector.shape_cast %27 : vector<1x128x128xbf16> to vector<128x128xbf16>
    %cst_29 = arith.constant dense<0.000000e+00> : vector<72x128xf32>
    %29 = tpu.matmul %26, %28, %cst_29 {dimension_numbers = #tpu.dot_dimension_numbers<[1], [0], [0], [1], [0, 0, 1, 1], [], []>} : vector<72x128xbf16>, vector<128x128xbf16>, vector<72x128xf32> -> vector<72x128xf32>
    %30 = arith.addf %25, %29 : vector<72x128xf32>
    %c4 = arith.constant 4 : index
    %c0_30 = arith.constant 0 : index
    %31 = vector.load %arg9[%c4, %c0_30] : memref<80x128xbf16, #tpu.memory_space<vmem>>, vector<72x128xbf16>
    %c4_31 = arith.constant 4 : index
    %c0_32 = arith.constant 0 : index
    %c0_33 = arith.constant 0 : index
    %32 = vector.load %arg4[%c4_31, %c0_32, %c0_33] : memref<9x128x128xbf16, #tpu.memory_space<vmem>>, vector<1x128x128xbf16>
    %33 = vector.shape_cast %32 : vector<1x128x128xbf16> to vector<128x128xbf16>
    %cst_34 = arith.constant dense<0.000000e+00> : vector<72x128xf32>
    %34 = tpu.matmul %31, %33, %cst_34 {dimension_numbers = #tpu.dot_dimension_numbers<[1], [0], [0], [1], [0, 0, 1, 1], [], []>} : vector<72x128xbf16>, vector<128x128xbf16>, vector<72x128xf32> -> vector<72x128xf32>
    %35 = arith.addf %30, %34 : vector<72x128xf32>
    %c5 = arith.constant 5 : index
    %c0_35 = arith.constant 0 : index
    %36 = vector.load %arg9[%c5, %c0_35] : memref<80x128xbf16, #tpu.memory_space<vmem>>, vector<72x128xbf16>
    %c5_36 = arith.constant 5 : index
    %c0_37 = arith.constant 0 : index
    %c0_38 = arith.constant 0 : index
    %37 = vector.load %arg4[%c5_36, %c0_37, %c0_38] : memref<9x128x128xbf16, #tpu.memory_space<vmem>>, vector<1x128x128xbf16>
    %38 = vector.shape_cast %37 : vector<1x128x128xbf16> to vector<128x128xbf16>
    %cst_39 = arith.constant dense<0.000000e+00> : vector<72x128xf32>
    %39 = tpu.matmul %36, %38, %cst_39 {dimension_numbers = #tpu.dot_dimension_numbers<[1], [0], [0], [1], [0, 0, 1, 1], [], []>} : vector<72x128xbf16>, vector<128x128xbf16>, vector<72x128xf32> -> vector<72x128xf32>
    %40 = arith.addf %35, %39 : vector<72x128xf32>
    %c6 = arith.constant 6 : index
    %c0_40 = arith.constant 0 : index
    %41 = vector.load %arg9[%c6, %c0_40] : memref<80x128xbf16, #tpu.memory_space<vmem>>, vector<72x128xbf16>
    %c6_41 = arith.constant 6 : index
    %c0_42 = arith.constant 0 : index
    %c0_43 = arith.constant 0 : index
    %42 = vector.load %arg4[%c6_41, %c0_42, %c0_43] : memref<9x128x128xbf16, #tpu.memory_space<vmem>>, vector<1x128x128xbf16>
    %43 = vector.shape_cast %42 : vector<1x128x128xbf16> to vector<128x128xbf16>
    %cst_44 = arith.constant dense<0.000000e+00> : vector<72x128xf32>
    %44 = tpu.matmul %41, %43, %cst_44 {dimension_numbers = #tpu.dot_dimension_numbers<[1], [0], [0], [1], [0, 0, 1, 1], [], []>} : vector<72x128xbf16>, vector<128x128xbf16>, vector<72x128xf32> -> vector<72x128xf32>
    %45 = arith.addf %40, %44 : vector<72x128xf32>
    %c7 = arith.constant 7 : index
    %c0_45 = arith.constant 0 : index
    %46 = vector.load %arg9[%c7, %c0_45] : memref<80x128xbf16, #tpu.memory_space<vmem>>, vector<72x128xbf16>
    %c7_46 = arith.constant 7 : index
    %c0_47 = arith.constant 0 : index
    %c0_48 = arith.constant 0 : index
    %47 = vector.load %arg4[%c7_46, %c0_47, %c0_48] : memref<9x128x128xbf16, #tpu.memory_space<vmem>>, vector<1x128x128xbf16>
    %48 = vector.shape_cast %47 : vector<1x128x128xbf16> to vector<128x128xbf16>
    %cst_49 = arith.constant dense<0.000000e+00> : vector<72x128xf32>
    %49 = tpu.matmul %46, %48, %cst_49 {dimension_numbers = #tpu.dot_dimension_numbers<[1], [0], [0], [1], [0, 0, 1, 1], [], []>} : vector<72x128xbf16>, vector<128x128xbf16>, vector<72x128xf32> -> vector<72x128xf32>
    %50 = arith.addf %45, %49 : vector<72x128xf32>
    %c8_50 = arith.constant 8 : index
    %c0_51 = arith.constant 0 : index
    %51 = vector.load %arg9[%c8_50, %c0_51] : memref<80x128xbf16, #tpu.memory_space<vmem>>, vector<72x128xbf16>
    %c8_52 = arith.constant 8 : index
    %c0_53 = arith.constant 0 : index
    %c0_54 = arith.constant 0 : index
    %52 = vector.load %arg4[%c8_52, %c0_53, %c0_54] : memref<9x128x128xbf16, #tpu.memory_space<vmem>>, vector<1x128x128xbf16>
    %53 = vector.shape_cast %52 : vector<1x128x128xbf16> to vector<128x128xbf16>
    %cst_55 = arith.constant dense<0.000000e+00> : vector<72x128xf32>
    %54 = tpu.matmul %51, %53, %cst_55 {dimension_numbers = #tpu.dot_dimension_numbers<[1], [0], [0], [1], [0, 0, 1, 1], [], []>} : vector<72x128xbf16>, vector<128x128xbf16>, vector<72x128xf32> -> vector<72x128xf32>
    %55 = arith.addf %50, %54 : vector<72x128xf32>
    %c0_56 = arith.constant 0 : index
    %c0_57 = arith.constant 0 : index
    %56 = vector.load %arg5[%c0_56, %c0_57] : memref<1x128xf32, #tpu.memory_space<vmem>>, vector<1x128xf32>
    %57 = vector.broadcast %56 : vector<1x128xf32> to vector<72x128xf32>
    %58 = arith.addf %55, %57 : vector<72x128xf32>
    %cst_58 = arith.constant 0.000000e+00 : f32
    %59 = vector.broadcast %cst_58 : f32 to vector<72x128xf32>
    %60 = arith.cmpf oge, %58, %59 : vector<72x128xf32>
    %cst_59 = arith.constant 2.000000e-01 : f32
    %61 = vector.broadcast %cst_59 : f32 to vector<72x128xf32>
    %62 = arith.mulf %61, %58 : vector<72x128xf32>
    %63 = arith.select %60, %58, %62 : vector<72x128xi1>, vector<72x128xf32>
    %c64_i32 = arith.constant 64 : i32
    %64 = arith.muli %arg1, %c64_i32 : i32
    %c4_i32 = arith.constant 4 : i32
    %65 = arith.subi %64, %c4_i32 : i32
    %66 = tpu.iota {dimensions = array<i32: 0>} : vector<72x1xi32>
    %67 = vector.broadcast %65 : i32 to vector<72x1xi32>
    %68 = arith.addi %67, %66 : vector<72x1xi32>
    %c0_i32 = arith.constant 0 : i32
    %69 = vector.broadcast %c0_i32 : i32 to vector<72x1xi32>
    %70 = arith.cmpi sge, %68, %69 : vector<72x1xi32>
    %c128_i32 = arith.constant 128 : i32
    %71 = vector.broadcast %c128_i32 : i32 to vector<72x1xi32>
    %72 = arith.cmpi slt, %68, %71 : vector<72x1xi32>
    %73 = arith.andi %70, %72 : vector<72x1xi1>
    %cst_60 = arith.constant 0.000000e+00 : f32
    %74 = vector.shape_cast %73 : vector<72x1xi1> to vector<72x1xi1>
    %75 = vector.broadcast %74 : vector<72x1xi1> to vector<72x128xi1>
    %76 = vector.broadcast %cst_60 : f32 to vector<72x128xf32>
    %77 = arith.select %75, %63, %76 : vector<72x128xi1>, vector<72x128xf32>
    %78 = arith.truncf %77 : vector<72x128xf32> to vector<72x128xbf16>
    %79 = vector.extract_strided_slice %78 {offsets = [0, 0], sizes = [64, 128], strides = [1, 1]} : vector<72x128xbf16> to vector<64x128xbf16>
    %c0_61 = arith.constant 0 : index
    %c0_62 = arith.constant 0 : index
    %c0_63 = arith.constant 0 : index
    %80 = vector.load %arg6[%c0_61, %c0_62, %c0_63] : memref<9x128x128xbf16, #tpu.memory_space<vmem>>, vector<1x128x128xbf16>
    %81 = vector.shape_cast %80 : vector<1x128x128xbf16> to vector<128x128xbf16>
    %cst_64 = arith.constant dense<0.000000e+00> : vector<64x128xf32>
    %82 = tpu.matmul %79, %81, %cst_64 {dimension_numbers = #tpu.dot_dimension_numbers<[1], [0], [0], [1], [0, 0, 1, 1], [], []>} : vector<64x128xbf16>, vector<128x128xbf16>, vector<64x128xf32> -> vector<64x128xf32>
    %83 = vector.extract_strided_slice %78 {offsets = [1, 0], sizes = [64, 128], strides = [1, 1]} : vector<72x128xbf16> to vector<64x128xbf16>
    %c1_65 = arith.constant 1 : index
    %c0_66 = arith.constant 0 : index
    %c0_67 = arith.constant 0 : index
    %84 = vector.load %arg6[%c1_65, %c0_66, %c0_67] : memref<9x128x128xbf16, #tpu.memory_space<vmem>>, vector<1x128x128xbf16>
    %85 = vector.shape_cast %84 : vector<1x128x128xbf16> to vector<128x128xbf16>
    %cst_68 = arith.constant dense<0.000000e+00> : vector<64x128xf32>
    %86 = tpu.matmul %83, %85, %cst_68 {dimension_numbers = #tpu.dot_dimension_numbers<[1], [0], [0], [1], [0, 0, 1, 1], [], []>} : vector<64x128xbf16>, vector<128x128xbf16>, vector<64x128xf32> -> vector<64x128xf32>
    %87 = arith.addf %82, %86 : vector<64x128xf32>
    %88 = vector.extract_strided_slice %78 {offsets = [2, 0], sizes = [64, 128], strides = [1, 1]} : vector<72x128xbf16> to vector<64x128xbf16>
    %c2_69 = arith.constant 2 : index
    %c0_70 = arith.constant 0 : index
    %c0_71 = arith.constant 0 : index
    %89 = vector.load %arg6[%c2_69, %c0_70, %c0_71] : memref<9x128x128xbf16, #tpu.memory_space<vmem>>, vector<1x128x128xbf16>
    %90 = vector.shape_cast %89 : vector<1x128x128xbf16> to vector<128x128xbf16>
    %cst_72 = arith.constant dense<0.000000e+00> : vector<64x128xf32>
    %91 = tpu.matmul %88, %90, %cst_72 {dimension_numbers = #tpu.dot_dimension_numbers<[1], [0], [0], [1], [0, 0, 1, 1], [], []>} : vector<64x128xbf16>, vector<128x128xbf16>, vector<64x128xf32> -> vector<64x128xf32>
    %92 = arith.addf %87, %91 : vector<64x128xf32>
    %93 = vector.extract_strided_slice %78 {offsets = [3, 0], sizes = [64, 128], strides = [1, 1]} : vector<72x128xbf16> to vector<64x128xbf16>
    %c3_73 = arith.constant 3 : index
    %c0_74 = arith.constant 0 : index
    %c0_75 = arith.constant 0 : index
    %94 = vector.load %arg6[%c3_73, %c0_74, %c0_75] : memref<9x128x128xbf16, #tpu.memory_space<vmem>>, vector<1x128x128xbf16>
    %95 = vector.shape_cast %94 : vector<1x128x128xbf16> to vector<128x128xbf16>
    %cst_76 = arith.constant dense<0.000000e+00> : vector<64x128xf32>
    %96 = tpu.matmul %93, %95, %cst_76 {dimension_numbers = #tpu.dot_dimension_numbers<[1], [0], [0], [1], [0, 0, 1, 1], [], []>} : vector<64x128xbf16>, vector<128x128xbf16>, vector<64x128xf32> -> vector<64x128xf32>
    %97 = arith.addf %92, %96 : vector<64x128xf32>
    %98 = vector.extract_strided_slice %78 {offsets = [4, 0], sizes = [64, 128], strides = [1, 1]} : vector<72x128xbf16> to vector<64x128xbf16>
    %c4_77 = arith.constant 4 : index
    %c0_78 = arith.constant 0 : index
    %c0_79 = arith.constant 0 : index
    %99 = vector.load %arg6[%c4_77, %c0_78, %c0_79] : memref<9x128x128xbf16, #tpu.memory_space<vmem>>, vector<1x128x128xbf16>
    %100 = vector.shape_cast %99 : vector<1x128x128xbf16> to vector<128x128xbf16>
    %cst_80 = arith.constant dense<0.000000e+00> : vector<64x128xf32>
    %101 = tpu.matmul %98, %100, %cst_80 {dimension_numbers = #tpu.dot_dimension_numbers<[1], [0], [0], [1], [0, 0, 1, 1], [], []>} : vector<64x128xbf16>, vector<128x128xbf16>, vector<64x128xf32> -> vector<64x128xf32>
    %102 = arith.addf %97, %101 : vector<64x128xf32>
    %103 = vector.extract_strided_slice %78 {offsets = [5, 0], sizes = [64, 128], strides = [1, 1]} : vector<72x128xbf16> to vector<64x128xbf16>
    %c5_81 = arith.constant 5 : index
    %c0_82 = arith.constant 0 : index
    %c0_83 = arith.constant 0 : index
    %104 = vector.load %arg6[%c5_81, %c0_82, %c0_83] : memref<9x128x128xbf16, #tpu.memory_space<vmem>>, vector<1x128x128xbf16>
    %105 = vector.shape_cast %104 : vector<1x128x128xbf16> to vector<128x128xbf16>
    %cst_84 = arith.constant dense<0.000000e+00> : vector<64x128xf32>
    %106 = tpu.matmul %103, %105, %cst_84 {dimension_numbers = #tpu.dot_dimension_numbers<[1], [0], [0], [1], [0, 0, 1, 1], [], []>} : vector<64x128xbf16>, vector<128x128xbf16>, vector<64x128xf32> -> vector<64x128xf32>
    %107 = arith.addf %102, %106 : vector<64x128xf32>
    %108 = vector.extract_strided_slice %78 {offsets = [6, 0], sizes = [64, 128], strides = [1, 1]} : vector<72x128xbf16> to vector<64x128xbf16>
    %c6_85 = arith.constant 6 : index
    %c0_86 = arith.constant 0 : index
    %c0_87 = arith.constant 0 : index
    %109 = vector.load %arg6[%c6_85, %c0_86, %c0_87] : memref<9x128x128xbf16, #tpu.memory_space<vmem>>, vector<1x128x128xbf16>
    %110 = vector.shape_cast %109 : vector<1x128x128xbf16> to vector<128x128xbf16>
    %cst_88 = arith.constant dense<0.000000e+00> : vector<64x128xf32>
    %111 = tpu.matmul %108, %110, %cst_88 {dimension_numbers = #tpu.dot_dimension_numbers<[1], [0], [0], [1], [0, 0, 1, 1], [], []>} : vector<64x128xbf16>, vector<128x128xbf16>, vector<64x128xf32> -> vector<64x128xf32>
    %112 = arith.addf %107, %111 : vector<64x128xf32>
    %113 = vector.extract_strided_slice %78 {offsets = [7, 0], sizes = [64, 128], strides = [1, 1]} : vector<72x128xbf16> to vector<64x128xbf16>
    %c7_89 = arith.constant 7 : index
    %c0_90 = arith.constant 0 : index
    %c0_91 = arith.constant 0 : index
    %114 = vector.load %arg6[%c7_89, %c0_90, %c0_91] : memref<9x128x128xbf16, #tpu.memory_space<vmem>>, vector<1x128x128xbf16>
    %115 = vector.shape_cast %114 : vector<1x128x128xbf16> to vector<128x128xbf16>
    %cst_92 = arith.constant dense<0.000000e+00> : vector<64x128xf32>
    %116 = tpu.matmul %113, %115, %cst_92 {dimension_numbers = #tpu.dot_dimension_numbers<[1], [0], [0], [1], [0, 0, 1, 1], [], []>} : vector<64x128xbf16>, vector<128x128xbf16>, vector<64x128xf32> -> vector<64x128xf32>
    %117 = arith.addf %112, %116 : vector<64x128xf32>
    %118 = vector.extract_strided_slice %78 {offsets = [8, 0], sizes = [64, 128], strides = [1, 1]} : vector<72x128xbf16> to vector<64x128xbf16>
    %c8_93 = arith.constant 8 : index
    %c0_94 = arith.constant 0 : index
    %c0_95 = arith.constant 0 : index
    %119 = vector.load %arg6[%c8_93, %c0_94, %c0_95] : memref<9x128x128xbf16, #tpu.memory_space<vmem>>, vector<1x128x128xbf16>
    %120 = vector.shape_cast %119 : vector<1x128x128xbf16> to vector<128x128xbf16>
    %cst_96 = arith.constant dense<0.000000e+00> : vector<64x128xf32>
    %121 = tpu.matmul %118, %120, %cst_96 {dimension_numbers = #tpu.dot_dimension_numbers<[1], [0], [0], [1], [0, 0, 1, 1], [], []>} : vector<64x128xbf16>, vector<128x128xbf16>, vector<64x128xf32> -> vector<64x128xf32>
    %122 = arith.addf %117, %121 : vector<64x128xf32>
    %c0_97 = arith.constant 0 : index
    %c0_98 = arith.constant 0 : index
    %123 = vector.load %arg7[%c0_97, %c0_98] : memref<1x128xf32, #tpu.memory_space<vmem>>, vector<1x128xf32>
    %124 = vector.broadcast %123 : vector<1x128xf32> to vector<64x128xf32>
    %125 = arith.addf %122, %124 : vector<64x128xf32>
    %cst_99 = arith.constant 1.000000e-01 : f32
    %126 = vector.broadcast %cst_99 : f32 to vector<64x128xf32>
    %127 = arith.mulf %126, %125 : vector<64x128xf32>
    %c0_100 = arith.constant 0 : index
    %c0_101 = arith.constant 0 : index
    %c0_102 = arith.constant 0 : index
    %128 = vector.load %arg2[%c0_100, %c0_101, %c0_102] : memref<1x64x128xf32, #tpu.memory_space<vmem>>, vector<1x64x128xf32>
    %129 = vector.shape_cast %128 : vector<1x64x128xf32> to vector<64x128xf32>
    %130 = arith.addf %127, %129 : vector<64x128xf32>
    %c0_103 = arith.constant 0 : index
    %c0_104 = arith.constant 0 : index
    %c0_105 = arith.constant 0 : index
    %131 = vector.load %arg8[%c0_103, %c0_104, %c0_105] : memref<1x64x128xf32, #tpu.memory_space<vmem>>, vector<1x64x128xf32>
    %132 = vector.shape_cast %131 : vector<1x64x128xf32> to vector<64x128xf32>
    %133 = vector.shape_cast %130 : vector<64x128xf32> to vector<1x64x128xf32>
    tpu.vector_store %arg8[%c0_103, %c0_104, %c0_105], %133 {strides = array<i32>} : memref<1x64x128xf32, #tpu.memory_space<vmem>>, vector<1x64x128xf32>,
    return
  }
  func.func @transform_0(%arg0: i32, %arg1: i32) -> (i32, i32, i32) {
    %c0_i32 = arith.constant 0 : i32
    %c0_i32_0 = arith.constant 0 : i32
    return %arg0, %arg1, %c0_i32 : i32, i32, i32
  }
  func.func @transform_1(%arg0: i32, %arg1: i32) -> (i32, i32, i32, i32) {
    %c0_i32 = arith.constant 0 : i32
    %c0_i32_0 = arith.constant 0 : i32
    %c0_i32_1 = arith.constant 0 : i32
    return %arg0, %arg1, %c0_i32, %c0_i32_0 : i32, i32, i32, i32
  }
  func.func @transform_2(%arg0: i32, %arg1: i32) -> (i32, i32, i32) {
    %c0_i32 = arith.constant 0 : i32
    %c0_i32_0 = arith.constant 0 : i32
    %c0_i32_1 = arith.constant 0 : i32
    %c0_i32_2 = arith.constant 0 : i32
    return %c0_i32, %c0_i32_0, %c0_i32_1 : i32, i32, i32
  }
  func.func @transform_3(%arg0: i32, %arg1: i32) -> (i32, i32) {
    %c0_i32 = arith.constant 0 : i32
    %c0_i32_0 = arith.constant 0 : i32
    %c0_i32_1 = arith.constant 0 : i32
    return %c0_i32, %c0_i32_0 : i32, i32
  }
  func.func @transform_4(%arg0: i32, %arg1: i32) -> (i32, i32, i32) {
    %c0_i32 = arith.constant 0 : i32
    %c0_i32_0 = arith.constant 0 : i32
    %c0_i32_1 = arith.constant 0 : i32
    %c0_i32_2 = arith.constant 0 : i32
    return %c0_i32, %c0_i32_0, %c0_i32_1 : i32, i32, i32
  }
  func.func @transform_5(%arg0: i32, %arg1: i32) -> (i32, i32) {
    %c0_i32 = arith.constant 0 : i32
    %c0_i32_0 = arith.constant 0 : i32
    %c0_i32_1 = arith.constant 0 : i32
    return %c0_i32, %c0_i32_0 : i32, i32
  }
  func.func @transform_6(%arg0: i32, %arg1: i32) -> (i32, i32, i32) {
    %c0_i32 = arith.constant 0 : i32
    %c0_i32_0 = arith.constant 0 : i32
    return %arg0, %arg1, %c0_i32 : i32, i32, i32
  }
}

</mosaic_0001>

<bundles_post_ra>
// kernel: tpu_custom_call.1
= control target key start
LH: loop header
LB: loop body
LE: loop exit
PB: predicated region body
PF: predicated region fallthrough
CT: control target
= control target key end

     0   :  { %s5054_s0 = inlined_call_operand.hbm [shape: f32[1,128,128], index: 0, kind: input, shape index: {}]   ;;  %s5055_s1 = inlined_call_operand.hbm [shape: f32[1,2,16,128], index: 1, kind: input, shape index: {}]   ;;  %s5056_s2 = inlined_call_operand.hbm [shape: bf16[9,128,128], index: 2, kind: input, shape index: {}]   ;;  %s5057_s3 = inlined_call_operand.vmem [shape: f32[1,128], index: 3, kind: input, shape index: {}]   ;;  %s5058_s4 = inlined_call_operand.hbm [shape: bf16[9,128,128], index: 4, kind: input, shape index: {}]   ;;  %s5059_s5 = inlined_call_operand.vmem [shape: f32[1,128], index: 5, kind: input, shape index: {}]   ;;  %s5060_s6 = inlined_call_operand.hbm [shape: f32[1,128,128], index: 6, kind: output, shape index: {}]  }
   0x1   :  { %5063 = sst [smem:[#allocation20_spill]] %s5054_s0 }
   0x2   :  { %5064 = sst [smem:[#allocation21_spill]] %s5056_s2 }
   0x3   :  { %5065 = sst [smem:[#allocation22_spill]] %s5058_s4 }
   0x4   :  { %11 = vsyncpa [#allocation4], 0 }
   0x5   :  { %13 = vsyncpa [#allocation4 + $0x1], 0 }
   0x6   :  { %14 = vsyncpa [#allocation7], 0 }
   0x7   :  { %16 = vsyncpa [#allocation7 + $0x1], 0 }
   0x8   :  { %17 = vsyncpa [#allocation10], 0 }
   0x9   :  { %18 = vsyncpa [#allocation5], 0 }
   0xa   :  { %20 = vsyncpa [#allocation5 + $0x1], 0  ;;  %s4247_s21 = smov 0   ;;  %s4249_s22 = smov 0  }
   0xb   :  { %s4251_s23 = smov 0   ;;  %s4253_s24 = smov 0  }
   0xc   :  { %s4255_s25 = smov 0   ;;  %s4257_s26 = smov 0  }
   0xd LB: > { %5066 = sst [smem:[#allocation17_spill]] %s4190_s23  ;;  %s4278_s27 = sadd.s32 4294967295, %s4202_s26   ;;  %s4202_s26 = sphi %s4257_s26, %s26_s26   ;;  %s4198_s25 = sphi %s4255_s25, %s5084_s25   ;;  %s4194_s24 = sphi %s4253_s24, %s5083_s24   ;;  %s4190_s23 = sphi %s4251_s23, %s5079_s23   ;;  %s4186_s22 = sphi %s4249_s22, %s5082_s22   ;;  %s4182_s21 = sphi %s4247_s21, %s5081_s21  }
   0xe   : > { %s3052_s28 = sadd.s32 4294967294, %s4202_s26   ;;  %p60_p0 = scmp.ne.s32.totalorder %s4186_s22, %s4182_s21 }
   0xf   : > { %p61_p1 = scmp.eq.s32.totalorder %s4278_s27, 0  ;;  %p198_p2 = scmp.eq.s32.totalorder %s4278_s27, 1 }
  0x10   : > { %p204_p3 = scmp.eq.s32.totalorder %s3052_s28, 1  ;;  %p3053_p5 = scmp.ge.s32.totalorder %s4202_s26, 1 }
  0x11   : > { %p4287_p4 = por %p61_p1, %p60_p0  ;;  %p211_p7 = scmp.lt.s32.totalorder %s4202_s26, 3 }
  0x12   : > { %p4292_p6 = por %p204_p3, %p60_p0  ;;  %s5069_s2 = sld [smem:[#allocation21_spill]] }
  0x13   : > { %p4300_p8 = pnand %p3053_p5, %p211_p7  ;;  %s4204_s11 = smov [#allocation8]  }
  0x14   : > { %s224_s12 = sshll.u32 %s4204_s11, 4  ;;  %p3056_p11 = scmp.ge.s32.totalorder %s4202_s26, 2  ;;  %s225_s12 = int_to_ptr.vmem [resolvable:$true] %s224_s12 }
  0x15   : > { %p3906_p9 = pneg %p4300_p8  ;;  %s5071_s4 = sld [smem:[#allocation22_spill]] }
  0x16   : > { %s4205_s16 = smov 64   ;;  %s4206_s17 = smov 4  }
  0x17   : > { %p3907_p10 = pnand %p3906_p9, %p61_p1  ;;  %s4207_s18 = smov [#allocation9]  }
  0x18   : > { %s222_s9 = sshll.u32 %s5069_s2, 4  ;;  %s241_s19 = sshll.u32 %s4207_s18, 4  ;;  %s223_s9 = int_to_ptr.hbm [resolvable:$true] %s222_s9  ;;  %s242_s19 = int_to_ptr.vmem [resolvable:$true] %s241_s19 }
  0x19   : > { %3909 = dma.hbm_to_vmem [thread:$0]  (!%p3907_p10), %s223_s9, 9216, %s225_s12, [#allocation7], %s4205_s16, %s4205_s16, %s4206_s17  }
  0x1a   : > { %s35_s20 = sadd.s32 1, %s4198_s25  ;;  %s47_s28 = sadd.s32 1, %s4190_s23 }
  0x1b   : > { %s239_s15 = sshll.u32 %s5071_s4, 4  ;;  %p36_p12 = scmp.ge.s32.totalorder %s35_s20, 2  ;;  %s240_s15 = int_to_ptr.hbm [resolvable:$true] %s239_s15 }
  0x1c   : > { %3912 = dma.hbm_to_vmem [thread:$0]  (!%p3907_p10), %s240_s15, 9216, %s242_s19, [#allocation10], %s4205_s16, %s4205_s16, %s4206_s17  }
  0x1d   : > { %p54_p13 = scmp.ne.s32.totalorder %s4190_s23, %s4186_s22  ;;  %p55_p0 = scmp.eq.s32.totalorder %s4202_s26, 0 }
  0x1e   : > { %p3926_p3 = scmp.lt.s32.totalorder %s4202_s26, 2  ;;  %s5086_s20 = smov (%p36_p12, %s35_s20), 0 }
  0x1f   : > { %5072 = sst [smem:[#allocation18_spill]] %s5086_s20  ;;  %p4320_p5 = por %p55_p0, %p54_p13 }
  0x20   : > { %p4326_p7 = por %p198_p2, %p54_p13  ;;  %s43_s9 = ssub.s32 %s4198_s25, %s5086_s20 }
  0x21   : > { %s258_s11 = sand.u32 1, %s4190_s23   ;;  %p45_p9 = scmp.eq.s32.totalorder %s43_s9, 0 }
  0x22   : > { %s3057_s12 = sshll.u32 %s258_s11, 6  ;;  %s3668_s13 = sshll.u32 %s4198_s25, 6 }
  0x23   : > { %s4335_s14 = scalar_select %p45_p9, %s4190_s23, %s47_s28  }
  0x24   : > { %s5076_s0 = sld [smem:[#allocation20_spill]]  ;;  %s262_s19 = scalar_lea.vmem [#allocation3], %s3057_s12 }
  0x25   : > { %5075 = sst [smem:[#allocation19_spill]] %s4335_s14  ;;  %s272_s2 = sshll.u32 %s262_s19, 4  ;;  %s273_s2 = int_to_ptr.vmem [resolvable:$true] %s272_s2 }
  0x26   : > { %p4344_p2 = pnand %p3926_p3, %p4320_p5  ;;  %s282_s9 = sand.u32 1, %s4202_s26  }
  0x27   : > { %s259_s28 = scalar_lea.sflag [#allocation4], %s258_s11  ;;  %s4208_s20 = smov 128  }
  0x28   : > { %s4209_s14 = smov 8   ;;  %s3669_s15 = sshll.u32 %s4198_s25, 4 }
  0x29   : > { %s283_s23 = scalar_lea.sflag [#allocation7], %s282_s9 }
  0x2a   : > { %s269_s17 = scalar_lea.hbm %s5076_s0, %s3668_s13  ;;  %s3060_s13 = sshll.u32 %s258_s11, 4 }
  0x2b   : > { %s270_s18 = sshll.u32 %s269_s17, 4  ;;  %s293_s17 = scalar_lea.hbm %s5055_s1, %s3669_s15  ;;  %s271_s18 = int_to_ptr.hbm [resolvable:$true] %s270_s18 }
  0x2c   : > { %3916 = dma.hbm_to_vmem [thread:$0]  (!%p4344_p2), %s271_s18, 1024, %s273_s2, %s259_s28, %s4208_s20, %s4208_s20, %s4209_s14  }
  0x2d   : > { %s294_s7 = sshll.u32 %s293_s17, 4  ;;  %s286_s19 = scalar_lea.vmem [#allocation6], %s3060_s13  ;;  %s295_s7 = int_to_ptr.hbm [resolvable:$true] %s294_s7 }
  0x2e   : > { %s296_s0 = sshll.u32 %s286_s19, 4  ;;  %308 = sbr.rel (%p4300_p8) target bundleno = 754 (0x2f2), region = 44  ;;  %s297_s0 = int_to_ptr.vmem [resolvable:$true] %s296_s0 }
  0x2f   : > { %3919 = dma.hbm_to_vmem [thread:$0]  (!%p4344_p2), %s295_s7, 256, %s297_s0, %s283_s23, %s4208_s20, %s4208_s20, %s4209_s14  }
  0x30   : > { %s4360_s2 = sand.u32 (!%p4300_p8), 1, %s4186_s22  }
  0x31   : > { %s3064_s11 = sshll.u32 (!%p4300_p8), %s4360_s2, 6  ;;  %s311_s18 = scalar_lea.sflag (!%p4300_p8), [#allocation4], %s4360_s2 }
  0x32   : > { %s4366_s28 = scalar_lea.vmem (!%p4300_p8), [#allocation3], %s3064_s11 }
  0x33   : > { %4161 = dma.done.wait (%p4287_p4), %s311_s18, 1024  }
  0x34   : > { %4163 = vsyncadd (%p4287_p4), %s311_s18, 4294966272  ;;  %s320_s0 = sand.u32 1, %s4278_s27   ;;  %s3065_s4 = sshll.u32 %s4360_s2, 4 }
  0x35   : > { %s321_s23 = scalar_lea.sflag [#allocation7], %s320_s0  ;;  %s4374_s10 = scalar_lea.vmem [#allocation6], %s3065_s4 }
  0x36   : > { %4165 = dma.done.wait (%p4287_p4), %s321_s23, 256  }
  0x37   : > { %4167 = vsyncadd (%p4287_p4), %s321_s23, 4294967040 }
  0x38   : > { %4169 = dma.done.wait (%p61_p1), [#allocation7], 9216  }
  0x39   : > { %4171 = vsyncadd (%p61_p1), [#allocation7], 4294958080 }
  0x3a   : > { %4173 = dma.done.wait (%p61_p1), [#allocation10], 9216  }
  0x3b   : > { %4175 = vsyncadd (%p61_p1), [#allocation10], 4294958080  ;;  %v3689_v0 = vld [vmem:[#allocation8 + $0x78] sm:$0xff]  ;;  %v3688_v4 = vld [vmem:[#allocation8 + $0x70] sm:$0xff]  ;;  %vm478_vm0 = vsmask.f32 7424 }
  0x3c   : > { %v3681_v1 = vld [vmem:[#allocation8 + $0x38] sm:$0xff]  ;;  %571 = vmatpush.bf16.msra.mxu0 %v3689_v0  ;;  %v3680_v5 = vld [vmem:[#allocation8 + $0x30] sm:$0xff]  ;;  %v3687_v8 = vld [vmem:[#allocation8 + $0x68] sm:$0xff]  ;;  %vm734_vm1 = vcmask 1046528   ;;  %vm860_vm2 = vsmask.f32 6400 }
  0x3d   : > { %v3697_v2 = vld [vmem:[#allocation8 + $0xb8] sm:$0xff]  ;;  %680 = vmatpush.bf16.msra.mxu1 %v3681_v1  ;;  %v3696_v6 = vld [vmem:[#allocation8 + $0xb0] sm:$0xff]  ;;  %v3679_v9 = vld [vmem:[#allocation8 + $0x28] sm:$0xff]  ;;  %vm1006_vm3 = vcmask 1045504   ;;  %vm1132_vm4 = vsmask.f32 5376 }
  0x3e   : > { %v3705_v3 = vld [vmem:[#allocation8 + $0xf8] sm:$0xff]  ;;  %797 = vmatpush.bf16.msra.mxu2 %v3697_v2  ;;  %v3704_v7 = vld [vmem:[#allocation8 + $0xf0] sm:$0xff]  ;;  %v3695_v10 = vld [vmem:[#allocation8 + $0xa8] sm:$0xff]  ;;  %vm1278_vm5 = vcmask 1044480   ;;  %vm1404_vm6 = vsmask.f32 4352 }
  0x3f   : > { %943 = vmatpush.bf16.msra.mxu3 %v3705_v3  ;;  %v3703_v11 = vld [vmem:[#allocation8 + $0xe8] sm:$0xff]  ;;  %v3686_v12 = vld [vmem:[#allocation8 + $0x60] sm:$0xff]  ;;  %v377_v20 = vld [vmem:[%s4366_s28 + $0x10] sm:$0xff]  ;;  %s3373_s27 = sshll.u32 %s4194_s24, 6  ;;  %s4973_s15 = scalar_lea.vmem [#allocation11], %s3064_s11 }
  0x40   : > { %572 = vmatpush.bf16.msra.mxu0 %v3688_v4  ;;  %v3678_v13 = vld [vmem:[#allocation8 + $0x20] sm:$0xff]  ;;  %v376_v19 = vld [vmem:[%s4366_s28 + $0x8] sm:$0xff]  ;;  %v378_v22 = vld [vmem:[%s4366_s28 + $0x18] sm:$0xff]  ;;  %s3374_s29 = sadd.s32 4294967292, %s3373_s27  ;;  %s2915_s17 = scalar_lea.hbm %s5060_s6, %s3373_s27 }
  0x41   : > { %681 = vmatpush.bf16.msra.mxu1 %v3680_v5  ;;  %v3694_v14 = vld [vmem:[#allocation8 + $0xa0] sm:$0xff]  ;;  %v4393_v23 = vpack.c.bf16 %v377_v20, %v376_v19  ;;  %v3685_v25 = vld [vmem:[#allocation8 + $0x58] sm:$0xff]  ;;  %v3684_v30 = vld [vmem:[#allocation8 + $0x50] sm:$0xff]  ;;  %s2918_s7 = sshll.u32 %s2915_s17, 4  ;;  %s2916_s19 = sshll.u32 %s4973_s15, 4  ;;  %s2919_s7 = int_to_ptr.hbm [resolvable:$true] %s2918_s7  ;;  %s2917_s19 = int_to_ptr.vmem [resolvable:$true] %s2916_s19 }
  0x42   : > { %798 = vmatpush.bf16.msra.mxu2 %v3696_v6  ;;  %v3702_v15 = vld [vmem:[#allocation8 + $0xe0] sm:$0xff]  ;;  %v3677_v26 = vld [vmem:[#allocation8 + $0x18] sm:$0xff]  ;;  %v3676_v31 = vld [vmem:[#allocation8 + $0x10] sm:$0xff]  ;;  %s2902_s24 = scalar_lea.sflag [#allocation5], %s4360_s2  ;;  %s4122_s11 = sshra.s32 %s2919_s7, 4  ;;  %s4123_s11 = int_to_ptr.hbm [resolvable:$true] %s4122_s11 }
  0x43   : > { %944 = vmatpush.bf16.msra.mxu3 %v3704_v7  ;;  %v371_v16 = vld [vmem:[%s4374_s10] sm:$0xff]  ;;  %v3693_v28 = vld [vmem:[#allocation8 + $0x98] sm:$0xff]  ;;  %3855 = vst [vmem:[#allocation2 + $0x8] sm:$0xff] %v4393_v23   ;;  %v380_v32 = vld [vmem:[%s4366_s28 + $0x28] sm:$0xff]  ;;  %v4403_v36 = vshll.u32 %v4393_v23, 16  ;;  %v4406_v38 = vshrl.u32 %v4393_v23, 16  ;;  %p4129_p10 = scmp.lt.s32.totalorder %s4123_s11, %s5060_s6 }
  0x44   : > { %573 = vmatpush.bf16.msra.mxu0 %v3687_v8  ;;  %v373_v17 = vpack.c.bf16 %v371_v16, %v371_v16  ;;  %v375_v18 = vld [vmem:[%s4366_s28] sm:$0xff]  ;;  %v3701_v29 = vld [vmem:[#allocation8 + $0xd8] sm:$0xff]  ;;  %v3692_v33 = vld [vmem:[#allocation8 + $0x90] sm:$0xff]  ;;  %v736_v62 = vrot.slane %v4393_v23, 1  ;;  %s4124_s18 = scalar_lea.hbm %s4123_s11, 64  ;;  %s4128_s23 = scalar_lea.hbm %s5060_s6, 128 }
  0x45   : > { %682 = vmatpush.bf16.msra.mxu1 %v3679_v9  ;;  %v383_v21 = vpack.c.bf16 %v375_v18, %v375_v18  ;;  %v379_v24 = vld [vmem:[%s4366_s28 + $0x20] sm:$0xff]  ;;  %v3700_v34 = vld [vmem:[#allocation8 + $0xd0] sm:$0xff]  ;;  %v3683_v42 = vld [vmem:[#allocation8 + $0x48] sm:$0xff]  ;;  %v869_v51 = vrot.slane %v4406_v38, 1  ;;  %v870_v52 = vrot.slane %v4403_v36, 2  ;;  %v489_v56 = vrot.slane %v4403_v36, 1  ;;  %p4125_p1 = scmp.ne.s32.totalorder %s4123_s11, %s4124_s18  ;;  %p4130_p12 = scmp.lt.s32.totalorder %s4128_s23, %s4124_s18 }
  0x46   : > { %799 = vmatpush.bf16.msra.mxu2 %v3695_v10  ;;  %374 = vst [vmem:[#allocation2] sm:$0xf] %v373_v17  ;;  %v4396_v27 = vpack.c.bf16 %v379_v24, %v378_v22  ;;  %v381_v35 = vld [vmem:[%s4366_s28 + $0x30] sm:$0xff]  ;;  %v3675_v43 = vld [vmem:[#allocation8 + $0x8] sm:$0xff]  ;;  %v3682_v53 = vld [vmem:[#allocation8 + $0x40] sm:$0xff] }
  0x47   : > { %945 = vmatpush.bf16.msra.mxu3 %v3703_v11  ;;  %391 = vst [vmem:[#allocation2 + $0x4] sm:$0xf] %v383_v21  ;;  %v4408_v39 = vpack.c.bf16 %v381_v35, %v380_v32  ;;  %v3691_v47 = vld [vmem:[#allocation8 + $0x88] sm:$0xff]  ;;  %v3674_v54 = vld [vmem:[#allocation8] sm:$0xff]  ;;  %v3713_v63 = vld [vmem:[#allocation8 + $0x138] sm:$0xff]  ;;  %v871_v2 = vor.u32 %v870_v52, %v869_v51  ;;  %v493_v18 = vor.u32 %v4406_v38, %v489_v56  ;;  %p4126_p4 = pnand %p4125_p1, %p4326_p7  ;;  %p4131_p13 = por %p4130_p12, %p4129_p10 }
  0x48   : > { %574 = vmatpush.bf16.msra.mxu0 %v3686_v12  ;;  %3856 = vst [vmem:[#allocation2 + $0x10] sm:$0xff] %v4396_v27   ;;  %v3699_v48 = vld [vmem:[#allocation8 + $0xc8] sm:$0xff]  ;;  %v3690_v59 = vld [vmem:[#allocation8 + $0x80] sm:$0xff]  ;;  %v382_v7 = vld [vmem:[%s4366_s28 + $0x38] sm:$0xff]  ;;  %v4424_v12 = vshll.u32 %v4396_v27, 16  ;;  %v738_v20 = vrot.slane %v4396_v27, 1 }
  0x49   : > { %683 = vmatpush.bf16.msra.mxu1 %v3678_v13  ;;  %3857 = vst [vmem:[#allocation2 + $0x18] sm:$0xff] %v4408_v39   ;;  %v3698_v60 = vld [vmem:[#allocation8 + $0xc0] sm:$0xff]  ;;  %v372_v6 = vld [vmem:[%s4374_s10 + $0x8] sm:$0xff]  ;;  %v3712_v11 = vld [vmem:[#allocation8 + $0x130] sm:$0xff]  ;;  %v4427_v13 = vshrl.u32 %v4396_v27, 16  ;;  %v740_v52 = vrot.slane %v4408_v39, 1  ;;  %p4127_p8 = pneg %p4126_p4 }
  0x4a   : > { %800 = vmatpush.bf16.msra.mxu2 %v3694_v14  ;;  %v3837_v9 = vpack.c.bf16 %v372_v6, %v382_v7  ;;  %v3711_v14 = vld [vmem:[#allocation8 + $0x128] sm:$0xff]  ;;  %v874_v16 = vrot.slane %v4424_v12, 2  ;;  %v3710_v17 = vld [vmem:[#allocation8 + $0x120] sm:$0xff]  ;;  %v497_v19 = vrot.slane %v4424_v12, 1  ;;  %v3709_v22 = vld [vmem:[#allocation8 + $0x118] sm:$0xff] }
  0x4b   : > { %946 = vmatpush.bf16.msra.mxu3 %v3702_v15  ;;  %v873_v15 = vrot.slane %v4427_v13, 1  ;;  %v3671_v24 = vld [vmem:[#allocation2 + $0x8] sm:$0xff]  ;;  %v3737_v32 = vld [vmem:[#allocation8 + $0x1f8] sm:$0xff]  ;;  %v3728_v35 = vld [vmem:[#allocation8 + $0x1b0] sm:$0xff]  ;;  %p4132_p0 = pnand %p4131_p13, %p4127_p8 }
  0x4c   : > { %575 = vmatpush.bf16.msra.mxu0 %v3685_v25  ;;  %3858 = vst [vmem:[#allocation2 + $0x20] sm:$0xff] %v3837_v9   ;;  %v498_v25 = vsel %vm478_vm0, %v493_v18, %v497_v19  ;;  %v3733_v7 = vld [vmem:[#allocation8 + $0x1d8] sm:$0xff]  ;;  %v3706_v9 = vld [vmem:[#allocation8 + $0x100] sm:$0xff]  ;;  %v3715_v18 = vld [vmem:[#allocation8 + $0x148] sm:$0xff] }
  0x4d   : > { %684 = vmatpush.bf16.msra.mxu1 %v3677_v26  ;;  %v713_v37 = vld [vmem:[#allocation2] sm:$0xe]  ;;  %v875_v21 = vor.u32 %v874_v16, %v873_v15  ;;  %v739_v26 = vsel %vm734_vm1, %v736_v62, %v738_v20  ;;  %v3732_v16 = vld [vmem:[#allocation8 + $0x1d0] sm:$0xff] }
  0x4e   : > { %801 = vmatpush.bf16.msra.mxu2 %v3693_v28  ;;  %v3840_v40 = vld [vmem:[#allocation2] sm:$0xff]   ;;  %v732_v41 = vunpack.c.l.b16 %v713_v37  ;;  %v3720_v37 = vld [vmem:[#allocation8 + $0x170] sm:$0xff] }
  0x4f   : > { %947 = vmatpush.bf16.msra.mxu3 %v3701_v29  ;;  %v4410_v44 = vunpack.c.h.b16 %v3840_v40  ;;  %v480_v45 = vshrl.u32 %v3840_v40, 16  ;;  %v482_v46 = vshll.u32 %v3840_v40, 16  ;;  %v3670_v3 = vld [vmem:[#allocation2] sm:$0xff]  ;;  %v876_v28 = vsel %vm860_vm2, %v871_v2, %v875_v21  ;;  %v3736_v40 = vld [vmem:[#allocation8 + $0x1f0] sm:$0xff] }
  0x50   : > { %576 = vmatpush.bf16.msra.mxu0 %v3684_v30  ;;  %v3729_v29 = vld [vmem:[#allocation8 + $0x1b8] sm:$0xff]  ;;  %v3708_v30 = vld [vmem:[#allocation8 + $0x110] sm:$0xff] }
  0x51   : > { %685 = vmatpush.bf16.msra.mxu1 %v3676_v31  ;;  %v484_v49 = vrot.slane %v482_v46, 1  ;;  %v733_v50 = vpack.c.b16 %v4410_v44, %v732_v41  ;;  %v3721_v31 = vld [vmem:[#allocation8 + $0x178] sm:$0xff]  ;;  %v3707_v41 = vld [vmem:[#allocation8 + $0x108] sm:$0xff] }
  0x52   : > { %802 = vmatpush.bf16.msra.mxu2 %v3692_v33  ;;  %v4438_v33 = vshll.u32 %v4408_v39, 16 }
  0x53   : > { %948 = vmatpush.bf16.msra.mxu3 %v3700_v34  ;;  %v485_v55 = vor.u32 %v484_v49, %v480_v45  ;;  %v862_v57 = vshrl.u32 %v733_v50, 16  ;;  %v865_v58 = vshll.u32 %v733_v50, 16  ;;  %v735_v61 = vrot.slane %v733_v50, 1  ;;  %v3727_v45 = vld [vmem:[#allocation8 + $0x1a8] sm:$0xff]  ;;  %v4445_v46 = vld [vmem:[#allocation2 + $0x20] sm:$0xff]  }
  0x54   : > { %577 = vmatpush.bf16.msra.mxu0 %v3683_v42  ;;  %v4441_v34 = vshrl.u32 %v4408_v39, 16  ;;  %v3735_v49 = vld [vmem:[#allocation8 + $0x1e8] sm:$0xff]  ;;  %v501_v50 = vor.u32 %v4427_v13, %v497_v19  ;;  %v505_v51 = vrot.slane %v4438_v33, 1 }
  0x55   : > { %686 = vmatpush.bf16.msra.mxu1 %v3675_v43  ;;  %v864_v0 = vrot.slane %v862_v57, 1  ;;  %v867_v1 = vrot.slane %v865_v58, 2  ;;  %v490_v4 = vsel %vm478_vm0, %v485_v55, %v489_v56  ;;  %v737_v8 = vsel %vm734_vm1, %v735_v61, %v736_v62  ;;  %v3726_v57 = vld [vmem:[#allocation8 + $0x1a0] sm:$0xff] }
  0x56   : > { %803 = vmatpush.bf16.msra.mxu2 %v3691_v47  ;;  %v877_v42 = vrot.slane %v4441_v34, 1  ;;  %v878_v43 = vrot.slane %v4438_v33, 2  ;;  %v839_v47 = vld [vmem:[#allocation2 + $0x24] sm:$0x3]  ;;  %v4451_v55 = vunpack.c.l.b16 %v4445_v46  ;;  %v3718_v58 = vld [vmem:[#allocation8 + $0x160] sm:$0xff]  ;;  %v741_v62 = vsel %vm734_vm1, %v738_v20, %v740_v52 }
  0x57   : > { %949 = vmatpush.bf16.msra.mxu3 %v3699_v48  ;;  %v868_v5 = vor.u32 %v867_v1, %v864_v0  ;;  %v3719_v48 = vld [vmem:[#allocation8 + $0x168] sm:$0xff]  ;;  %v858_v56 = vunpack.c.l.b16 %v839_v47  ;;  %v3734_v1 = vld [vmem:[#allocation8 + $0x1e0] sm:$0xff]  ;;  %v509_v19 = vor.u32 %v4441_v34, %v505_v51 }
  0x58   : > { %578 = vmatpush.bf16.msra.mxu0 %v3682_v53  ;;  %v879_v53 = vor.u32 %v878_v43, %v877_v42  ;;  %v1257_v42 = vld [vmem:[#allocation2] sm:$0x8] }
  0x59   : > { %687 = vmatpush.bf16.msra.mxu1 %v3674_v54  ;;  %v872_v10 = vsel %vm860_vm2, %v868_v5, %v871_v2  ;;  %v435_v54 = vld [vmem:[#allocation2 + $0x24] sm:$0x1]  ;;  %v4457_v0 = vpack.c.b16 %v858_v56, %v4451_v55  ;;  %v3743_v56 = vld [vmem:[#allocation8 + $0x228] sm:$0xff] }
  0x5a   : > { %804 = vmatpush.bf16.msra.mxu2 %v3690_v59  ;;  %v3672_v59 = vld [vmem:[#allocation2 + $0x10] sm:$0xff]  ;;  %v472_v61 = vunpack.c.l.b16 %v435_v54  ;;  %v3725_v2 = vld [vmem:[#allocation8 + $0x198] sm:$0xff] }
  0x5b   : > { %950 = vmatpush.bf16.msra.mxu3 %v3698_v60  ;;  %579 = vmatmul.bf16.vlgmr.msra.gmra.mxu0 %v490_v4  ;;  %v506_v60 = vsel %vm478_vm0, %v501_v50, %v505_v51  ;;  %v3717_v4 = vld [vmem:[#allocation8 + $0x158] sm:$0xff]  ;;  %v882_v5 = vshrl.u32 %v4457_v0, 16  ;;  %v885_v6 = vshll.u32 %v4457_v0, 16 }
  0x5c   : > { %1069 = vmatpush.bf16.msrb.mxu0 %v3713_v63  ;;  %688 = vmatmul.bf16.vlgmr.msra.gmra.mxu1 %v3670_v3  ;;  %v880_v63 = vsel %vm860_vm2, %v875_v21, %v879_v53  ;;  %v477_v3 = vpack.c.b16 %v472_v61, %v4451_v55 }
  0x5d   : > { %805 = vmatmul.bf16.vlgmr.msra.gmra.mxu2 %v737_v8  ;;  %1215 = vmatpush.bf16.msrb.mxu1 %v3721_v31  ;;  %v3724_v8 = vld [vmem:[#allocation8 + $0x190] sm:$0xff]  ;;  %v887_v15 = vrot.slane %v885_v6, 2 }
  0x5e   : > { %951 = vmatmul.bf16.vlgmr.msra.gmra.mxu3 %v872_v10  ;;  %1341 = vmatpush.bf16.msrb.mxu2 %v3729_v29  ;;  %v3716_v10 = vld [vmem:[#allocation8 + $0x150] sm:$0xff]  ;;  %v742_v21 = vrot.slane %v477_v3, 1  ;;  %v515_v43 = vshrl.u32 %v477_v3, 16 }
  0x5f   : > { %1487 = vmatpush.bf16.msrb.mxu3 %v3737_v32  ;;  %v3730_v32 = vld [vmem:[#allocation8 + $0x1c0] sm:$0xff] }
  0x60   : > { %1070 = vmatpush.bf16.msrb.mxu0 %v3712_v11  ;;  %v511_v11 = vshll.u32 %v477_v3, 16  ;;  %v1413_v3 = vrot.slane %v4406_v38, 3 }
  0x61   : > { %1216 = vmatpush.bf16.msrb.mxu1 %v3720_v37  ;;  %v3744_v37 = vld [vmem:[#allocation8 + $0x230] sm:$0xff] }
  0x62   : > { %1342 = vmatpush.bf16.msrb.mxu2 %v3728_v35  ;;  %v513_v20 = vrot.slane %v511_v11, 1  ;;  %v3745_v35 = vld [vmem:[#allocation8 + $0x238] sm:$0xff] }
  0x63   : > { %1488 = vmatpush.bf16.msrb.mxu3 %v3736_v40  ;;  %v409_v40 = vld [vmem:[#allocation2 + $0x20] sm:$0xf] }
  0x64   : > { %1071 = vmatpush.bf16.msrb.mxu0 %v3711_v14  ;;  %v884_v14 = vrot.slane %v882_v5, 1  ;;  %v514_v29 = vsel %vm478_vm0, %v509_v19, %v513_v20  ;;  %v1008_v5 = vrot.slane %v4393_v23, 2  ;;  %v1146_v19 = vrot.slane %v4424_v12, 3 }
  0x65   : > { %1217 = vmatpush.bf16.msrb.mxu1 %v3719_v48  ;;  %v1276_v48 = vunpack.c.l.b16 %v1257_v42 }
  0x66   : > { %1343 = vmatpush.bf16.msrb.mxu2 %v3727_v45  ;;  %v621_v45 = vunpack.c.l.b16 %v409_v40  ;;  %v1012_v40 = vrot.slane %v4408_v39, 2 }
  0x67   : > { %1489 = vmatpush.bf16.msrb.mxu3 %v3735_v49  ;;  %v517_v49 = vor.u32 %v515_v43, %v513_v20  ;;  %v1417_v20 = vrot.slane %v4427_v13, 3  ;;  %v1284_v43 = vrot.slane %v4408_v39, 3 }
  0x68   : > { %1072 = vmatpush.bf16.msrb.mxu0 %v3710_v17  ;;  %v3723_v17 = vld [vmem:[#allocation8 + $0x188] sm:$0xff]  ;;  %v626_v50 = vpack.c.b16 %v621_v45, %v621_v45 }
  0x69   : > { %1218 = vmatpush.bf16.msrb.mxu1 %v3718_v58 }
  0x6a   : > { %1344 = vmatpush.bf16.msrb.mxu2 %v3726_v57 }
  0x6b   : > { %584 = vmatmul.bf16.gmra.mxu0 %v498_v25  ;;  %1490 = vmatpush.bf16.msrb.mxu3 %v3734_v1  ;;  %v3722_v25 = vld [vmem:[#allocation8 + $0x180] sm:$0xff] }
  0x6c   : > { %1073 = vmatpush.bf16.msrb.mxu0 %v3709_v22  ;;  %693 = vmatmul.bf16.gmra.mxu1 %v3671_v24  ;;  %v888_v22 = vor.u32 %v887_v15, %v884_v14  ;;  %v3731_v24 = vld [vmem:[#allocation8 + $0x1c8] sm:$0xff] }
  0x6d   : > { %810 = vmatmul.bf16.gmra.mxu2 %v739_v26  ;;  %1219 = vmatpush.bf16.msrb.mxu1 %v3717_v4  ;;  %v3714_v26 = vld [vmem:[#allocation8 + $0x140] sm:$0xff]  ;;  %v1414_v4 = vrot.slane %v4403_v36, 4 }
  0x6e   : > { %956 = vmatmul.bf16.gmra.mxu3 %v876_v28  ;;  %1345 = vmatpush.bf16.msrb.mxu2 %v3725_v2  ;;  %v3673_v28 = vld [vmem:[#allocation2 + $0x18] sm:$0xff]  ;;  %v889_v31 = vsel %vm860_vm2, %v879_v53, %v888_v22 }
  0x6f   : > { %1491 = vmatpush.bf16.msrb.mxu3 %v3733_v7  ;;  %v1415_v14 = vor.u32 %v1414_v4, %v1413_v3 }
  0x70   : > { %1074 = vmatpush.bf16.msrb.mxu0 %v3708_v30  ;;  %v743_v30 = vsel %vm734_vm1, %v740_v52, %v742_v21  ;;  %v1277_v52 = vpack.c.b16 %v4410_v44, %v1276_v48 }
  0x71   : > { %1220 = vmatpush.bf16.msrb.mxu1 %v3716_v10  ;;  %v1280_v10 = vrot.slane %v4393_v23, 3 }
  0x72   : > { %1346 = vmatpush.bf16.msrb.mxu2 %v3724_v8  ;;  %v1406_v57 = vshrl.u32 %v1277_v52, 16  ;;  %v1409_v58 = vshll.u32 %v1277_v52, 16  ;;  %v1279_v7 = vrot.slane %v1277_v52, 3 }
  0x73   : > { %1492 = vmatpush.bf16.msrb.mxu3 %v3732_v16 }
  0x74   : > { %1075 = vmatpush.bf16.msrb.mxu0 %v3707_v41  ;;  %v985_v41 = vld [vmem:[#allocation2] sm:$0xc]  ;;  %v1408_v1 = vrot.slane %v1406_v57, 3  ;;  %v1411_v2 = vrot.slane %v1409_v58, 4 }
  0x75   : > { %1221 = vmatpush.bf16.msrb.mxu1 %v3715_v18  ;;  %v1004_v47 = vunpack.c.l.b16 %v985_v41  ;;  %v1145_v18 = vrot.slane %v4427_v13, 2  ;;  %v3740_v13 = vld [vmem:[#allocation8 + $0x210] sm:$0xff] }
  0x76   : > { %1347 = vmatpush.bf16.msrb.mxu2 %v3723_v17  ;;  %v1412_v11 = vor.u32 %v1411_v2, %v1408_v1  ;;  %v3741_v17 = vld [vmem:[#allocation8 + $0x218] sm:$0xff] }
  0x77   : > { %1493 = vmatpush.bf16.msrb.mxu3 %v3731_v24  ;;  %v1005_v51 = vpack.c.b16 %v4410_v44, %v1004_v47  ;;  %v1147_v24 = vor.u32 %v1146_v19, %v1145_v18  ;;  %v1402_v47 = vunpack.c.h.b16 %v4445_v46 }
  0x78   : > { %1076 = vmatpush.bf16.msrb.mxu0 %v3706_v9  ;;  %v1416_v16 = vsel %vm1404_vm6, %v1412_v11, %v1415_v14 }
  0x79   : > { %1222 = vmatpush.bf16.msrb.mxu1 %v3714_v26  ;;  %v1134_v53 = vshrl.u32 %v1005_v51, 16  ;;  %v1137_v54 = vshll.u32 %v1005_v51, 16  ;;  %v1007_v6 = vrot.slane %v1005_v51, 2  ;;  %v3739_v51 = vld [vmem:[#allocation8 + $0x208] sm:$0xff] }
  0x7a   : > { %1348 = vmatpush.bf16.msrb.mxu2 %v3722_v25  ;;  %v1282_v25 = vrot.slane %v4396_v27, 3 }
  0x7b   : > { %589 = vmatmul.bf16.gmra.mxu0 %v506_v60  ;;  %1494 = vmatpush.bf16.msrb.mxu3 %v3730_v32  ;;  %v1136_v60 = vrot.slane %v1134_v53, 2  ;;  %v1139_v61 = vrot.slane %v1137_v54, 3  ;;  %v1009_v15 = vsel %vm1006_vm3, %v1007_v6, %v1008_v5  ;;  %v1150_v32 = vrot.slane %v4438_v33, 3 }
  0x7c   : > { %698 = vmatmul.bf16.gmra.mxu1 %v3672_v59  ;;  %1604 = vmatpush.bf16.msra.mxu0 %v3745_v35  ;;  %v3742_v59 = vld [vmem:[#allocation8 + $0x220] sm:$0xff]  ;;  %v1422_v35 = vrot.slane %v4438_v33, 4  ;;  %v1426_v54 = vshrl.u32 %v4445_v46, 16 }
  0x7d   : > { %815 = vmatmul.bf16.gmra.mxu2 %v741_v62  ;;  %v1141_v62 = vrot.slane %v4406_v38, 2  ;;  %v1140_v8 = vor.u32 %v1139_v61, %v1136_v60  ;;  %v3738_v61 = vld [vmem:[#allocation8 + $0x200] sm:$0xff] }
  0x7e   : > { %961 = vmatmul.bf16.gmra.mxu3 %v880_v63  ;;  %v1142_v63 = vrot.slane %v4403_v36, 3  ;;  %v1281_v36 = vsel %vm1278_vm5, %v1279_v7, %v1280_v10 }
  0x80   : > { %1605 = vmatpush.bf16.msra.mxu0 %v3744_v37  ;;  %v1143_v9 = vor.u32 %v1142_v63, %v1141_v62  ;;  %v1111_v37 = vld [vmem:[#allocation2 + $0x24] sm:$0x7]  ;;  %v1014_v62 = vrot.slane %v4457_v0, 2 }
  0x81   : > { %v1130_v42 = vunpack.c.l.b16 %v1111_v37 }
  0x82   : > { %v1144_v38 = vsel %vm1132_vm4, %v1140_v8, %v1143_v9 }
  0x84   : > { %1606 = vmatpush.bf16.msra.mxu0 %v3743_v56  ;;  %v1429_v56 = vshll.u32 %v4445_v46, 16 }
  0x86   : > { %v1431_v60 = vrot.slane %v1429_v56, 4 }
  0x88   : > { %1607 = vmatpush.bf16.msra.mxu0 %v3742_v59  ;;  %v1428_v59 = vrot.slane %v1426_v54, 3 }
  0x8a   : > { %v1432_v2 = vor.u32 %v1431_v60, %v1428_v59 }
  0x8b   : > { %594 = vmatmul.bf16.gmra.mxu0 %v514_v29  ;;  %v1148_v29 = vsel %vm1132_vm4, %v1143_v9, %v1147_v24 }
  0x8c   : > { %703 = vmatmul.bf16.gmra.mxu1 %v3673_v28  ;;  %1608 = vmatpush.bf16.msra.mxu0 %v3741_v17 }
  0x8d   : > { %820 = vmatmul.bf16.gmra.mxu2 %v743_v30  ;;  %v1283_v30 = vsel %vm1278_vm5, %v1280_v10, %v1282_v25 }
  0x8e   : > { %966 = vmatmul.bf16.gmra.mxu3 %v889_v31 }
  0x90   : > { %1609 = vmatpush.bf16.msra.mxu0 %v3740_v13 }
  0x94   : > { %1610 = vmatpush.bf16.msra.mxu0 %v3739_v51 }
  0x98   : > { %1611 = vmatpush.bf16.msra.mxu0 %v3738_v61 }
  0x9b   : > { %599 = vmatmul.bf16.gmra.mxu0 %v517_v49 }
  0x9c   : > { %708 = vmatmul.bf16.gmra.mxu1 %v626_v50  ;;  %v1131_v50 = vpack.c.b16 %v1130_v42, %v4451_v55 }
  0x9d   : > { %825 = vmatmul.bf16.gmra.mxu2 %v742_v21  ;;  %v1418_v21 = vrot.slane %v4424_v12, 4  ;;  %v1149_v12 = vrot.slane %v4441_v34, 2 }
  0x9e   : > { %971 = vmatmul.bf16.gmra.mxu3 %v888_v22  ;;  %v1010_v22 = vrot.slane %v4396_v27, 2  ;;  %v1421_v27 = vrot.slane %v4441_v34, 3  ;;  %v1285_v34 = vsel %vm1278_vm5, %v1282_v25, %v1284_v43  ;;  %v1154_v52 = vshrl.u32 %v1131_v50, 16 }
  0x9f   : > { %v1419_v26 = vor.u32 %v1418_v21, %v1417_v20  ;;  %v1151_v41 = vor.u32 %v1150_v32, %v1149_v12  ;;  %v1157_v53 = vshll.u32 %v1131_v50, 16  ;;  %v1286_v1 = vrot.slane %v1131_v50, 3 }
  0xa0   : > { %v1011_v28 = vsel %vm1006_vm3, %v1008_v5, %v1010_v22  ;;  %v1423_v45 = vor.u32 %v1422_v35, %v1421_v27  ;;  %v1013_v48 = vsel %vm1006_vm3, %v1010_v22, %v1012_v40  ;;  %v1156_v57 = vrot.slane %v1154_v52, 2 }
  0xa1   : > { %v1420_v31 = vsel %vm1404_vm6, %v1415_v14, %v1419_v26  ;;  %v1152_v49 = vsel %vm1132_vm4, %v1147_v24, %v1151_v41  ;;  %v1159_v58 = vrot.slane %v1157_v53, 3  ;;  %v1015_v5 = vsel %vm1006_vm3, %v1012_v40, %v1014_v62 }
  0xa2   : > { %v1424_v33 = vsel %vm1404_vm6, %v1419_v26, %v1423_v45  ;;  %v1287_v8 = vsel %vm1278_vm5, %v1284_v43, %v1286_v1  ;;  %v1433_v9 = vsel %vm1404_vm6, %v1423_v45, %v1432_v2  ;;  %v3874_v45 = vld [vmem:[#allocation2 + $0xc] sm:$0xff]  }
  0xa3   : > { %v1160_v63 = vor.u32 %v1159_v58, %v1156_v57  ;;  %v3875_v57 = vld [vmem:[#allocation2 + $0x14] sm:$0xff]  }
  0xa5   : > { %v1161_v6 = vsel %vm1132_vm4, %v1151_v41, %v1160_v63 }
  0xab   : > { %1077 = vmatmul.bf16.vlgmr.msrb.gmra.mxu0 %v1009_v15 }
  0xac   : > { %1223 = vmatmul.bf16.vlgmr.msrb.gmra.mxu1 %v1144_v38 }
  0xad   : > { %1349 = vmatmul.bf16.vlgmr.msrb.gmra.mxu2 %v1281_v36 }
  0xae   : > { %1495 = vmatmul.bf16.vlgmr.msrb.gmra.mxu3 %v1416_v16 }
  0xbb   : > { %1082 = vmatmul.bf16.gmra.mxu0 %v1011_v28  ;;  %v3845_v28 = vunpack.c.l.b16 %v4393_v23 }
  0xbc   : > { %1228 = vmatmul.bf16.gmra.mxu1 %v1148_v29 }
  0xbd   : > { %1354 = vmatmul.bf16.gmra.mxu2 %v1283_v30 }
  0xbe   : > { %1500 = vmatmul.bf16.gmra.mxu3 %v1420_v31  ;;  %v1546_v31 = vpack.c.b16 %v3845_v28, %v4410_v44 }
  0xcb   : > { %1087 = vmatmul.bf16.gmra.mxu0 %v1013_v48 }
  0xcc   : > { %1233 = vmatmul.bf16.gmra.mxu1 %v1152_v49 }
  0xcd   : > { %1359 = vmatmul.bf16.gmra.mxu2 %v1285_v34 }
  0xce   : > { %1505 = vmatmul.bf16.gmra.mxu3 %v1424_v33 }
  0xd8   : > { %v580_v3 = vpop.f32.mrf.mxu0 }
  0xd9   : > { %v689_v4 = vpop.f32.mrf.mxu1 }
  0xda   : > { %v690_v7 = vadd.f32 %v689_v4, %v580_v3  ;;  %v3854_v4 = vunpack.c.h.b16 %v4408_v39 }
  0xdb   : > { %1092 = vmatmul.bf16.gmra.mxu0 %v1015_v5 }
  0xdc   : > { %1238 = vmatmul.bf16.gmra.mxu1 %v1161_v6 }
  0xdd   : > { %1364 = vmatmul.bf16.gmra.mxu2 %v1287_v8 }
  0xde   : > { %1510 = vmatmul.bf16.gmra.mxu3 %v1433_v9 }
  0xe0   : > { %v806_v0 = vpop.f32.mrf.mxu2  ;;  %v4507_v14 = vpop.f32.mrf.mxu0 }
  0xe1   : > { %v952_v10 = vpop.f32.mrf.mxu3  ;;  %v830_v11 = vadd.f32 %v806_v0, %v690_v7  ;;  %v4509_v15 = vpop.f32.mrf.mxu1  ;;  %v1549_v7 = vpack.c.b16 %v4451_v55, %v3854_v4  ;;  %v1550_v55 = vpack.c.b16 %v1402_v47, %v1402_v47 }
  0xe3   : > { %v976_v38 = vadd.f32 %v952_v10, %v830_v11 }
  0xe8   : > { %v4511_v36 = vpop.f32.mrf.mxu2  ;;  %v585_v17 = vpop.f32.mrf.mxu0 }
  0xe9   : > { %v4513_v16 = vpop.f32.mrf.mxu3  ;;  %v694_v18 = vpop.f32.mrf.mxu1 }
  0xea   : > { %v695_v19 = vadd.f32 %v694_v18, %v585_v17 }
  0xeb   : > { %1097 = vmatmul.bf16.gmra.mxu0 %v1014_v62 }
  0xec   : > { %1243 = vmatmul.bf16.gmra.mxu1 %v1160_v63 }
  0xed   : > { %1369 = vmatmul.bf16.gmra.mxu2 %v1286_v1 }
  0xee   : > { %1515 = vmatmul.bf16.gmra.mxu3 %v1432_v2 }
  0xf0   : > { %v811_v20 = vpop.f32.mrf.mxu2  ;;  %v4515_v24 = vpop.f32.mrf.mxu0 }
  0xf1   : > { %v957_v21 = vpop.f32.mrf.mxu3  ;;  %v832_v22 = vadd.f32 %v811_v20, %v695_v19  ;;  %v4517_v25 = vpop.f32.mrf.mxu1 }
  0xf3   : > { %v978_v26 = vadd.f32 %v957_v21, %v832_v22 }
  0xf8   : > { %v4520_v29 = vpop.f32.mrf.mxu2  ;;  %v590_v13 = vpop.f32.mrf.mxu0 }
  0xf9   : > { %v4522_v30 = vpop.f32.mrf.mxu3  ;;  %v699_v12 = vpop.f32.mrf.mxu1 }
  0xfa   : > { %v700_v32 = vadd.f32 %v699_v12, %v590_v13 }
  0xfb   : > { %1612 = vmatmul.bf16.vlgmr.msra.gmra.mxu0 %v1546_v31 }
 0x100   : > { %v816_v27 = vpop.f32.mrf.mxu2  ;;  %v4525_v40 = vpop.f32.mrf.mxu0 }
 0x101   : > { %v962_v35 = vpop.f32.mrf.mxu3  ;;  %v834_v37 = vadd.f32 %v816_v27, %v700_v32  ;;  %v4527_v41 = vpop.f32.mrf.mxu1 }
 0x103   : > { %v980_v42 = vadd.f32 %v962_v35, %v834_v37 }
 0x108   : > { %v4529_v43 = vpop.f32.mrf.mxu2  ;;  %v595_v48 = vpop.f32.mrf.mxu0 }
 0x109   : > { %v4531_v23 = vpop.f32.mrf.mxu3  ;;  %v704_v49 = vpop.f32.mrf.mxu1 }
 0x10a   : > { %v705_v44 = vadd.f32 %v704_v49, %v595_v48 }
 0x10b   : > { %1617 = vmatmul.bf16.gmra.mxu0 %v3874_v45 }
 0x110   : > { %v821_v50 = vpop.f32.mrf.mxu2  ;;  %v4533_v33 = vpop.f32.mrf.mxu0 }
 0x111   : > { %v967_v51 = vpop.f32.mrf.mxu3  ;;  %v836_v34 = vadd.f32 %v821_v50, %v705_v44  ;;  %v4535_v52 = vpop.f32.mrf.mxu1 }
 0x113   : > { %v4537_v53 = vadd.f32 %v967_v51, %v836_v34  ;;  %v3753_v34 = vld [vmem:[#allocation9 + $0x38] sm:$0xff] }
 0x114   : > { %1996 = vmatpush.bf16.msrb.mxu0 %v3753_v34  ;;  %3884 = vmatpush.bf16.msra.mxu2 %v3753_v34 }
 0x118   : > { %v4539_v54 = vpop.f32.mrf.mxu2  ;;  %v600_v58 = vpop.f32.mrf.mxu0 }
 0x119   : > { %v4541_v56 = vpop.f32.mrf.mxu3  ;;  %v709_v59 = vpop.f32.mrf.mxu1 }
 0x11a   : > { %v710_v60 = vadd.f32 %v709_v59, %v600_v58 }
 0x11b   : > { %1622 = vmatmul.bf16.gmra.mxu0 %v3875_v57 }
 0x120   : > { %v826_v61 = vpop.f32.mrf.mxu2  ;;  %v602_v1 = vpop.f32.mrf.mxu0 }
 0x121   : > { %v972_v62 = vpop.f32.mrf.mxu3  ;;  %v838_v63 = vadd.f32 %v826_v61, %v710_v60  ;;  %v711_v2 = vpop.f32.mrf.mxu1  ;;  %v3761_v61 = vld [vmem:[#allocation9 + $0x78] sm:$0xff]  ;;  %v3751_v1 = vld [vmem:[#allocation9 + $0x28] sm:$0xff] }
 0x122   : > { %3876 = vmatpush.bf16.msra.mxu3 %v3761_v61  ;;  %1915 = vmatpush.bf16.msra.mxu1 %v3761_v61 }
 0x123   : > { %v4543_v3 = vadd.f32 %v972_v62, %v838_v63  ;;  %v3752_v62 = vld [vmem:[#allocation9 + $0x30] sm:$0xff] }
 0x124   : > { %1997 = vmatpush.bf16.msrb.mxu0 %v3752_v62  ;;  %3885 = vmatpush.bf16.msra.mxu2 %v3752_v62 }
 0x128   : > { %v828_v5 = vpop.f32.mrf.mxu2  ;;  %v1078_v8 = vpop.f32.mrf.mxu0  ;;  %1998 = vmatpush.bf16.msrb.mxu0 %v3751_v1  ;;  %3886 = vmatpush.bf16.msra.mxu2 %v3751_v1 }
 0x129   : > { %v974_v6 = vpop.f32.mrf.mxu3  ;;  %v1224_v9 = vpop.f32.mrf.mxu1  ;;  %v1102_v0 = vadd.f32 %v1078_v8, %v976_v38  ;;  %v3750_v8 = vld [vmem:[#allocation9 + $0x20] sm:$0xff] }
 0x12a   : > { %v707_v6 = vadd.f32 %v4535_v52, %v4533_v33  ;;  %v3760_v33 = vld [vmem:[#allocation9 + $0x70] sm:$0xff] }
 0x12b   : > { %v1248_v10 = vadd.f32 %v1224_v9, %v1102_v0  ;;  %1627 = vmatmul.bf16.gmra.mxu0 %v1549_v7  ;;  %v3748_v52 = vld [vmem:[#allocation9 + $0x10] sm:$0xff]  ;;  %3877 = vmatpush.bf16.msra.mxu3 %v3760_v33 }
 0x12c   : > { %v837_v9 = vadd.f32 %v4539_v54, %v707_v6  ;;  %1999 = vmatpush.bf16.msrb.mxu0 %v3750_v8  ;;  %3887 = vmatpush.bf16.msra.mxu2 %v3750_v8  ;;  %v1688_v6 = vlaneseq }
 0x12d   : > { %1916 = vmatpush.bf16.msra.mxu1 %v3760_v33 }
 0x12e   : > { %v4600_v8 = vshrl.u32 %v1688_v6, 7 }
 0x130   : > { %v1350_v11 = vpop.f32.mrf.mxu2  ;;  %v4547_v19 = vpop.f32.mrf.mxu0 }
 0x131   : > { %v1496_v17 = vpop.f32.mrf.mxu3  ;;  %v1374_v18 = vadd.f32 %v1350_v11, %v1248_v10  ;;  %v4549_v20 = vpop.f32.mrf.mxu1  ;;  %v3749_v11 = vld [vmem:[#allocation9 + $0x18] sm:$0xff] }
 0x132   : > { %2000 = vmatpush.bf16.msrb.mxu0 %v3749_v11  ;;  %3888 = vmatpush.bf16.msra.mxu2 %v3749_v11 }
 0x133   : > { %v4551_v21 = vadd.f32 %v1496_v17, %v1374_v18  ;;  %v983_v17 = vadd.f32 %v4541_v56, %v837_v9  ;;  %v4605_v9 = vld [vmem:[%s5057_s3] ss:$0 sm:$0xff] }
 0x136   : > { %2001 = vmatpush.bf16.msrb.mxu0 %v3748_v52  ;;  %3889 = vmatpush.bf16.msra.mxu2 %v3748_v52 }
 0x138   : > { %v4553_v22 = vpop.f32.mrf.mxu2  ;;  %v1083_v38 = vpop.f32.mrf.mxu0 }
 0x139   : > { %v4555_v39 = vpop.f32.mrf.mxu3  ;;  %v1229_v28 = vpop.f32.mrf.mxu1  ;;  %v1104_v31 = vadd.f32 %v1083_v38, %v978_v26 }
 0x13b   : > { %v1250_v13 = vadd.f32 %v1229_v28, %v1104_v31  ;;  %1632 = vmatmul.bf16.gmra.mxu0 %v1550_v55 }
 0x140   : > { %v1355_v12 = vpop.f32.mrf.mxu2  ;;  %v4560_v35 = vpop.f32.mrf.mxu0 }
 0x141   : > { %v1501_v32 = vpop.f32.mrf.mxu3  ;;  %v1376_v27 = vadd.f32 %v1355_v12, %v1250_v13  ;;  %v4562_v37 = vpop.f32.mrf.mxu1  ;;  %v3747_v12 = vld [vmem:[#allocation9 + $0x8] sm:$0xff] }
 0x142   : > { %2002 = vmatpush.bf16.msrb.mxu0 %v3747_v12  ;;  %3890 = vmatpush.bf16.msra.mxu2 %v3747_v12 }
 0x143   : > { %v4564_v45 = vadd.f32 %v1501_v32, %v1376_v27 }
 0x148   : > { %v4566_v48 = vpop.f32.mrf.mxu2  ;;  %v1088_v46 = vpop.f32.mrf.mxu0 }
 0x149   : > { %v4568_v49 = vpop.f32.mrf.mxu3  ;;  %v1234_v47 = vpop.f32.mrf.mxu1  ;;  %v1106_v44 = vadd.f32 %v1088_v46, %v980_v42 }
 0x14b   : > { %v1252_v50 = vadd.f32 %v1234_v47, %v1106_v44 }
 0x150   : > { %v1360_v26 = vpop.f32.mrf.mxu2  ;;  %v4570_v58 = vpop.f32.mrf.mxu0 }
 0x151   : > { %v1506_v51 = vpop.f32.mrf.mxu3  ;;  %v1378_v57 = vadd.f32 %v1360_v26, %v1252_v50  ;;  %v4572_v59 = vpop.f32.mrf.mxu1  ;;  %v3746_v50 = vld [vmem:[#allocation9] sm:$0xff]  ;;  %v3759_v26 = vld [vmem:[#allocation9 + $0x68] sm:$0xff] }
 0x152   : > { %2003 = vmatpush.bf16.msrb.mxu0 %v3746_v50  ;;  %3878 = vmatpush.bf16.msra.mxu3 %v3759_v26 }
 0x153   : > { %v4574_v60 = vadd.f32 %v1506_v51, %v1378_v57  ;;  %v692_v51 = vadd.f32 %v4509_v15, %v4507_v14  ;;  %1917 = vmatpush.bf16.msra.mxu1 %v3759_v26  ;;  %3891 = vmatpush.bf16.msra.mxu2 %v3746_v50  ;;  %v3800_v15 = vld [vmem:[#allocation9 + $0x1b0] sm:$0xff] }
 0x155   : > { %v831_v34 = vadd.f32 %v4511_v36, %v692_v51  ;;  %v3757_v36 = vld [vmem:[#allocation9 + $0x58] sm:$0xff] }
 0x157   : > { %v977_v14 = vadd.f32 %v4513_v16, %v831_v34 }
 0x158   : > { %v4576_v42 = vpop.f32.mrf.mxu2  ;;  %v1093_v2 = vpop.f32.mrf.mxu0 }
 0x159   : > { %v4578_v63 = vpop.f32.mrf.mxu3  ;;  %v1239_v4 = vpop.f32.mrf.mxu1  ;;  %v1108_v5 = vadd.f32 %v1093_v2, %v4537_v53  ;;  %v3758_v2 = vld [vmem:[#allocation9 + $0x60] sm:$0xff] }
 0x15a   : > { %1918 = vmatpush.bf16.msra.mxu1 %v3758_v2  ;;  %3879 = vmatpush.bf16.msra.mxu3 %v3758_v2 }
 0x15b   : > { %v1254_v7 = vadd.f32 %v1239_v4, %v1108_v5 }
 0x15e   : > { %1919 = vmatpush.bf16.msra.mxu1 %v3757_v36  ;;  %3880 = vmatpush.bf16.msra.mxu3 %v3757_v36 }
 0x160   : > { %v1365_v0 = vpop.f32.mrf.mxu2  ;;  %v1095_v55 = vpop.f32.mrf.mxu0 }
 0x161   : > { %v1511_v10 = vpop.f32.mrf.mxu3  ;;  %v1380_v18 = vadd.f32 %v1365_v0, %v1254_v7  ;;  %v1241_v38 = vpop.f32.mrf.mxu1  ;;  %v1109_v53 = vadd.f32 %v1095_v55, %v983_v17  ;;  %v1103_v7 = vadd.f32 %v4547_v19, %v977_v14  ;;  %v4607_v0 = vstv %s3374_s29 }
 0x163   : > { %v4585_v28 = vadd.f32 %v1511_v10, %v1380_v18  ;;  %v1255_v54 = vadd.f32 %v1241_v38, %v1109_v53  ;;  %v3799_v10 = vld [vmem:[#allocation9 + $0x1a8] sm:$0xff]  ;;  %v3756_v18 = vld [vmem:[#allocation9 + $0x50] sm:$0xff]  ;;  %v1249_v55 = vadd.f32 %v4549_v20, %v1103_v7  ;;  %v1699_v38 = vadd.s32 %v4607_v0, %v4600_v8 }
 0x164   : > { %v1690_v53 = vadd.s32 8, %v4600_v8  ;;  %1920 = vmatpush.bf16.msra.mxu1 %v3756_v18  ;;  %3881 = vmatpush.bf16.msra.mxu3 %v3756_v18 }
 0x165   : > { %v1375_v33 = vadd.f32 %v4553_v22, %v1249_v55  ;;  %vm1708_vm8 = vcmp.ge.s32.totalorder %v1699_v38, 0  ;;  %vm1717_vm9 = vcmp.lt.s32.totalorder %v1699_v38, 128  ;;  %v3785_v38 = vld [vmem:[#allocation9 + $0x138] sm:$0xff] }
 0x166   : > { %vm1726_vm10 = vmand %vm1708_vm8, %vm1717_vm9  ;;  %2345 = vmatpush.bf16.msrb.mxu2 %v3785_v38 }
 0x167   : > { %v1521_v22 = vadd.f32 %v4555_v39, %v1375_v33  ;;  %v3777_v39 = vld [vmem:[#allocation9 + $0xf8] sm:$0xff] }
 0x168   : > { %v1367_v31 = vpop.f32.mrf.mxu2  ;;  %v1098_v56 = vpop.f32.mrf.mxu0 }
 0x169   : > { %v1513_v13 = vpop.f32.mrf.mxu3  ;;  %v1381_v32 = vadd.f32 %v1367_v31, %v1255_v54  ;;  %v1244_v27 = vpop.f32.mrf.mxu1  ;;  %v1110_v46 = vadd.f32 %v1098_v56, %v4543_v3  ;;  %v3801_v3 = vld [vmem:[#allocation9 + $0x1b8] sm:$0xff]  ;;  %v3798_v54 = vld [vmem:[#allocation9 + $0x1a0] sm:$0xff]  ;;  %v3755_v31 = vld [vmem:[#allocation9 + $0x48] sm:$0xff] }
 0x16a   : > { %2585 = vmatpush.bf16.msra.mxu0 %v3801_v3  ;;  %1921 = vmatpush.bf16.msra.mxu1 %v3755_v31 }
 0x16b   : > { %v4588_v47 = vadd.f32 %v1513_v13, %v1381_v32  ;;  %v1256_v44 = vadd.f32 %v1244_v27, %v1110_v46  ;;  %v697_v13 = vadd.f32 %v4517_v25, %v4515_v24  ;;  %3882 = vmatpush.bf16.msra.mxu3 %v3755_v31  ;;  %v3797_v32 = vld [vmem:[#allocation9 + $0x198] sm:$0xff]  ;;  %v3754_v27 = vld [vmem:[#allocation9 + $0x40] sm:$0xff]  ;;  %v1691_v24 = vadd.s32 16, %v4600_v8 }
 0x16d   : > { %v833_v12 = vadd.f32 %v4520_v29, %v697_v13  ;;  %v3796_v29 = vld [vmem:[#allocation9 + $0x190] sm:$0xff] }
 0x16e   : > { %2586 = vmatpush.bf16.msra.mxu0 %v3800_v15  ;;  %1922 = vmatpush.bf16.msra.mxu1 %v3754_v27  ;;  %v1692_v15 = vadd.s32 24, %v4600_v8 }
 0x16f   : > { %3883 = vmatpush.bf16.msra.mxu3 %v3754_v27  ;;  %v979_v25 = vadd.f32 %v4522_v30, %v833_v12  ;;  %v702_v30 = vadd.f32 %v4527_v41, %v4525_v40 }
 0x170   : > { %v1370_v57 = vpop.f32.mrf.mxu2  ;;  %v1100_v1 = vpop.f32.mrf.mxu0 }
 0x171   : > { %v1516_v61 = vpop.f32.mrf.mxu3  ;;  %v1382_v62 = vadd.f32 %v1370_v57, %v1256_v44  ;;  %v1246_v4 = vpop.f32.mrf.mxu1  ;;  %v1105_v51 = vadd.f32 %v4560_v35, %v979_v25  ;;  %v1701_v57 = vadd.s32 %v4607_v0, %v1691_v24  ;;  %v835_v36 = vadd.f32 %v4529_v43, %v702_v30 }
 0x172   : > { %2587 = vmatpush.bf16.msra.mxu0 %v3799_v10  ;;  %2230 = vmatpush.bf16.msrb.mxu1 %v3777_v39  ;;  %v3776_v4 = vld [vmem:[#allocation9 + $0xf0] sm:$0xff]  ;;  %v1702_v43 = vadd.s32 %v4607_v0, %v1692_v15 }
 0x173   : > { %v4594_v5 = vadd.f32 %v1516_v61, %v1382_v62  ;;  %v3795_v62 = vld [vmem:[#allocation9 + $0x188] sm:$0xff]  ;;  %v1251_v6 = vadd.f32 %v4562_v37, %v1105_v51  ;;  %vm1710_vm15 = vcmp.ge.s32.totalorder %v1701_v57, 0 }
 0x174   : > { %v3775_v37 = vld [vmem:[#allocation9 + $0xe8] sm:$0xff] }
 0x175   : > { %v1377_v7 = vadd.f32 %v4566_v48, %v1251_v6  ;;  %v3783_v51 = vld [vmem:[#allocation9 + $0x128] sm:$0xff]  ;;  %v3782_v6 = vld [vmem:[#allocation9 + $0x120] sm:$0xff] }
 0x176   : > { %2588 = vmatpush.bf16.msra.mxu0 %v3798_v54  ;;  %2231 = vmatpush.bf16.msrb.mxu1 %v3776_v4  ;;  %v1697_v4 = vadd.s32 64, %v4600_v8 }
 0x177   : > { %v1523_v48 = vadd.f32 %v4568_v49, %v1377_v7  ;;  %v1693_v49 = vadd.s32 32, %v4600_v8 }
 0x178   : > { %v1372_v16 = vpop.f32.mrf.mxu2  ;;  %v1613_v17 = vpop.f32.mrf.mxu0 }
 0x179   : > { %v1518_v11 = vpop.f32.mrf.mxu3  ;;  %v1637_v19 = vadd.f32 %v1613_v17, %v4551_v21  ;;  %v1700_v21 = vadd.s32 %v4607_v0, %v1690_v53  ;;  %v3794_v16 = vld [vmem:[#allocation9 + $0x180] sm:$0xff]  ;;  %v981_v17 = vadd.f32 %v4531_v23, %v835_v36  ;;  %v4693_v36 = vadd.s32 %v4607_v0, %v1697_v4 }
 0x17a   : > { %2589 = vmatpush.bf16.msra.mxu0 %v3797_v32  ;;  %2232 = vmatpush.bf16.msrb.mxu1 %v3775_v37  ;;  %v1694_v32 = vadd.s32 40, %v4600_v8 }
 0x17b   : > { %v1650_v52 = vadd.f32 %v4605_v9, %v1637_v19  ;;  %vm1709_vm11 = vcmp.ge.s32.totalorder %v1700_v21, 0  ;;  %vm1718_vm12 = vcmp.lt.s32.totalorder %v1700_v21, 128  ;;  %v1107_v54 = vadd.f32 %v4570_v58, %v981_v17  ;;  %v3773_v58 = vld [vmem:[#allocation9 + $0xd8] sm:$0xff] }
 0x17c   : > { %vm1727_vm14 = vmand %vm1709_vm11, %vm1718_vm12  ;;  %vm1720_vm11 = vcmp.lt.s32.totalorder %v1702_v43, 128 }
 0x17d   : > { %v1668_v20 = vmul.f32 0.2, %v1650_v52  ;;  %vm1659_vm7 = vcmp.ge.f32.partialorder %v1650_v52, 0.0 }
 0x17e   : > { %2590 = vmatpush.bf16.msra.mxu0 %v3796_v29 }
 0x17f   : > { %v1677_v46 = vsel %vm1659_vm7, %v1650_v52, %v1668_v20  ;;  %vm1719_vm7 = vcmp.lt.s32.totalorder %v1701_v57, 128  ;;  %v3774_v52 = vld [vmem:[#allocation9 + $0xe0] sm:$0xff]  ;;  %v4671_v57 = vadd.s32 %v4607_v0, %v1694_v32 }
 0x180   : > { %v1615_v56 = vpop.f32.mrf.mxu0  ;;  %v1753_v26 = vsel %vm1726_vm10, %v1677_v46, 0.0  ;;  %vm1728_vm9 = vmand %vm1710_vm15, %vm1719_vm7  ;;  %vm1711_vm10 = vcmp.ge.s32.totalorder %v1702_v43, 0  ;;  %2233 = vmatpush.bf16.msrb.mxu1 %v3774_v52 }
 0x181   : > { %v1638_v44 = vadd.f32 %v1615_v56, %v1521_v22  ;;  %v1762_v61 = vpack.c.bf16 %v1753_v26, %v1753_v26  ;;  %v3784_v22 = vld [vmem:[#allocation9 + $0x130] sm:$0xff]  ;;  %vm1713_vm7 = vcmp.ge.s32.totalorder %v4671_v57, 0 }
 0x182   : > { %2591 = vmatpush.bf16.msra.mxu0 %v3795_v62  ;;  %2346 = vmatpush.bf16.msrb.mxu2 %v3784_v22 }
 0x183   : > { %v1651_v50 = vadd.f32 %v4605_v9, %v1638_v44  ;;  %v1813_v10 = vunpack.c.l.b16 %v1762_v61  ;;  %v1253_v44 = vadd.f32 %v4572_v59, %v1107_v54  ;;  %v1695_v61 = vadd.s32 48, %v4600_v8 }
 0x184   : > { %2234 = vmatpush.bf16.msrb.mxu1 %v3773_v58 }
 0x185   : > { %vm1660_vm13 = vcmp.ge.f32.partialorder %v1651_v50, 0.0  ;;  %v1669_v34 = vmul.f32 0.2, %v1651_v50  ;;  %v1379_v26 = vadd.f32 %v4576_v42, %v1253_v44 }
 0x186   : > { %2592 = vmatpush.bf16.msra.mxu0 %v3794_v16  ;;  %2347 = vmatpush.bf16.msrb.mxu2 %v3783_v51  ;;  %v1696_v51 = vadd.s32 56, %v4600_v8 }
 0x187   : > { %v1678_v3 = vsel %vm1660_vm13, %v1651_v50, %v1669_v34  ;;  %vm1729_vm13 = vmand %vm1711_vm10, %vm1720_vm11  ;;  %v1703_v50 = vadd.s32 %v4607_v0, %v1693_v49 }
 0x188   : > { %v1754_v1 = vsel %vm1727_vm14, %v1678_v3, 0.0  ;;  %v1618_v2 = vpop.f32.mrf.mxu0  ;;  %v3772_v3 = vld [vmem:[#allocation9 + $0xd0] sm:$0xff] }
 0x189   : > { %v1763_v14 = vpack.c.bf16 %v1754_v1, %v1754_v1  ;;  %v1639_v35 = vadd.f32 %v1618_v2, %v4564_v45  ;;  %vm1712_vm14 = vcmp.ge.s32.totalorder %v1703_v50, 0  ;;  %vm1721_vm15 = vcmp.lt.s32.totalorder %v1703_v50, 128  ;;  %2235 = vmatpush.bf16.msrb.mxu1 %v3772_v3  ;;  %v3768_v3 = vld [vmem:[#allocation9 + $0xb0] sm:$0xff] }
 0x18a   : > { %v1525_v1 = vadd.f32 %v4578_v63, %v1379_v26  ;;  %vm1730_vm10 = vmand %vm1712_vm14, %vm1721_vm15  ;;  %2348 = vmatpush.bf16.msrb.mxu2 %v3782_v6 }
 0x18b   : > { %v4633_v40 = vunpack.c.l.b16 %v1763_v14  ;;  %v1652_v41 = vadd.f32 %v4605_v9, %v1639_v35  ;;  %v3771_v35 = vld [vmem:[#allocation9 + $0xc8] sm:$0xff] }
 0x18d   : > { %v4637_v11 = vpack.c.b16 %v4633_v40, %v1813_v10  ;;  %vm1661_vm8 = vcmp.ge.f32.partialorder %v1652_v41, 0.0  ;;  %v1670_v45 = vmul.f32 0.2, %v1652_v41  ;;  %2236 = vmatpush.bf16.msrb.mxu1 %v3771_v35 }
 0x18f   : > { %v1679_v18 = vsel %vm1661_vm8, %v1652_v41, %v1670_v45  ;;  %2004 = vmatmul.bf16.vlgmr.msrb.gmra.mxu0 %v4637_v11  ;;  %v4644_v55 = vshrl.u32 %v4637_v11, 16  ;;  %v4647_v19 = vshll.u32 %v4637_v11, 16  ;;  %vm1722_vm8 = vcmp.lt.s32.totalorder %v4671_v57, 128 }
 0x190   : > { %v1755_v53 = vsel %vm1728_vm9, %v1679_v18, 0.0  ;;  %v1620_v33 = vpop.f32.mrf.mxu0  ;;  %v2524_v7 = vrot.slane %v4637_v11, 3  ;;  %v2284_v16 = vrot.slane %v4637_v11, 2  ;;  %v2042_v52 = vrot.slane %v4637_v11, 1 }
 0x191   : > { %v1764_v31 = vpack.c.bf16 %v1755_v53, %v1755_v53  ;;  %v1640_v23 = vadd.f32 %v1620_v33, %v1523_v48  ;;  %v2639_v13 = vrot.slane %v4644_v55, 3  ;;  %v2640_v20 = vrot.slane %v4647_v19, 4  ;;  %v3781_v48 = vld [vmem:[#allocation9 + $0x118] sm:$0xff]  ;;  %v3770_v33 = vld [vmem:[#allocation9 + $0xc0] sm:$0xff] }
 0x192   : > { %v2399_v27 = vrot.slane %v4644_v55, 2  ;;  %v2400_v46 = vrot.slane %v4647_v19, 3  ;;  %v1832_v14 = vrot.slane %v4647_v19, 1  ;;  %v2157_v10 = vrot.slane %v4644_v55, 1  ;;  %2349 = vmatpush.bf16.msrb.mxu2 %v3781_v48  ;;  %2237 = vmatpush.bf16.msrb.mxu1 %v3770_v33 }
 0x193   : > { %v4653_v21 = vunpack.c.l.b16 %v1764_v31  ;;  %v1653_v12 = vadd.f32 %v4605_v9, %v1640_v23  ;;  %v4657_v56 = vor.u32 %v2640_v20, %v2639_v13  ;;  %v2158_v41 = vrot.slane %v4647_v19, 2 }
 0x194   : > { %v4667_v29 = vor.u32 %v2400_v46, %v2399_v27  ;;  %v1833_v53 = vor.u32 %v1832_v14, %v4644_v55  ;;  %v3780_v27 = vld [vmem:[#allocation9 + $0x110] sm:$0xff]  ;;  %v3769_v46 = vld [vmem:[#allocation9 + $0xb8] sm:$0xff] }
 0x195   : > { %v2764_v24 = vpack.c.b16 %v4653_v21, %v4633_v40  ;;  %vm1662_vm12 = vcmp.ge.f32.partialorder %v1653_v12, 0.0  ;;  %v1671_v25 = vmul.f32 0.2, %v1653_v12  ;;  %v2159_v58 = vor.u32 %v2158_v41, %v2157_v10  ;;  %2103 = vmatpush.bf16.msrb.mxu3 %v3769_v46  ;;  %v3767_v10 = vld [vmem:[#allocation9 + $0xa8] sm:$0xff] }
 0x196   : > { %2350 = vmatpush.bf16.msrb.mxu2 %v3780_v27 }
 0x197   : > { %v1680_v39 = vsel %vm1662_vm12, %v1653_v12, %v1671_v25  ;;  %vm1731_vm12 = vmand %vm1713_vm7, %vm1722_vm8 }
 0x198   : > { %v1756_v34 = vsel %vm1729_vm13, %v1680_v39, 0.0  ;;  %v1623_v59 = vpop.f32.mrf.mxu0 }
 0x199   : > { %v1765_v62 = vpack.c.bf16 %v1756_v34, %v1756_v34  ;;  %v1641_v30 = vadd.f32 %v1623_v59, %v4574_v60  ;;  %v4684_v60 = vadd.s32 %v4607_v0, %v1695_v61  ;;  %v3779_v34 = vld [vmem:[#allocation9 + $0x108] sm:$0xff]  ;;  %2104 = vmatpush.bf16.msrb.mxu3 %v3768_v3 }
 0x19a   : > { %2351 = vmatpush.bf16.msrb.mxu2 %v3779_v34 }
 0x19b   : > { %v4676_v42 = vunpack.c.l.b16 %v1765_v62  ;;  %v1654_v2 = vadd.f32 %v4605_v9, %v1641_v30  ;;  %vm1714_vm13 = vcmp.ge.s32.totalorder %v4684_v60, 0  ;;  %vm1723_vm14 = vcmp.lt.s32.totalorder %v4684_v60, 128 }
 0x19c   : > { %vm1732_vm7 = vmand %vm1714_vm13, %vm1723_vm14  ;;  %vm1725_vm13 = vcmp.lt.s32.totalorder %v4693_v36, 128 }
 0x19d   : > { %v4688_v63 = vpack.c.b16 %v4676_v42, %v4653_v21  ;;  %vm1663_vm9 = vcmp.ge.f32.partialorder %v1654_v2, 0.0  ;;  %v1672_v15 = vmul.f32 0.2, %v1654_v2  ;;  %2105 = vmatpush.bf16.msrb.mxu3 %v3767_v10 }
 0x19f   : > { %v1681_v37 = vsel %vm1663_vm9, %v1654_v2, %v1672_v15  ;;  %2009 = vmatmul.bf16.gmra.mxu0 %v4688_v63  ;;  %v4701_v45 = vshll.u32 %v4688_v63, 16  ;;  %v2525_v43 = vrot.slane %v4688_v63, 3  ;;  %v4705_v17 = vshrl.u32 %v4688_v63, 16  ;;  %v3778_v15 = vld [vmem:[#allocation9 + $0x100] sm:$0xff] }
 0x1a0   : > { %v1757_v18 = vsel %vm1730_vm10, %v1681_v37, 0.0  ;;  %v1625_v38 = vpop.f32.mrf.mxu0  ;;  %v2285_v19 = vrot.slane %v4688_v63, 2  ;;  %v2043_v11 = vrot.slane %v4688_v63, 1  ;;  %2352 = vmatpush.bf16.msrb.mxu2 %v3778_v15 }
 0x1a1   : > { %v1766_v54 = vpack.c.bf16 %v1757_v18, %v1757_v18  ;;  %v1642_v31 = vadd.f32 %v1625_v38, %v1525_v1  ;;  %v1837_v23 = vrot.slane %v4701_v45, 1  ;;  %v2526_v49 = vsel %vm1278_vm5, %v2524_v7, %v2525_v43  ;;  %v3766_v18 = vld [vmem:[#allocation9 + $0xa0] sm:$0xff] }
 0x1a2   : > { %v2160_v13 = vrot.slane %v4705_v17, 1  ;;  %v2161_v20 = vrot.slane %v4701_v45, 2  ;;  %v4719_v55 = vsel %vm1006_vm3, %v2284_v16, %v2285_v19  ;;  %v4733_v25 = vsel %vm734_vm1, %v2042_v52, %v2043_v11  ;;  %2106 = vmatpush.bf16.msrb.mxu3 %v3766_v18 }
 0x1a3   : > { %v4722_v12 = vunpack.c.l.b16 %v1766_v54  ;;  %v1655_v22 = vadd.f32 %v4605_v9, %v1642_v31  ;;  %v1838_v32 = vsel %vm478_vm0, %v1833_v53, %v1837_v23  ;;  %v2642_v50 = vrot.slane %v4705_v17, 3 }
 0x1a4   : > { %1923 = vmatmul.bf16.vlgmr.msra.gmra.mxu1 %v1838_v32  ;;  %v4728_v44 = vor.u32 %v2161_v20, %v2160_v13  ;;  %v2643_v26 = vrot.slane %v4701_v45, 4  ;;  %v2402_v30 = vrot.slane %v4705_v17, 2  ;;  %v2403_v57 = vrot.slane %v4701_v45, 3 }
 0x1a5   : > { %vm1664_vm11 = vcmp.ge.f32.partialorder %v1655_v22, 0.0  ;;  %v1673_v39 = vmul.f32 0.2, %v1655_v22  ;;  %v2765_v59 = vpack.c.b16 %v4722_v12, %v4676_v42  ;;  %v1706_v7 = vadd.s32 %v4607_v0, %v1696_v51  ;;  %v3764_v51 = vld [vmem:[#allocation9 + $0x90] sm:$0xff] }
 0x1a6   : > { %v4746_v61 = vsel %vm860_vm2, %v2159_v58, %v4728_v44  ;;  %v4748_v62 = vor.u32 %v2643_v26, %v2642_v50  ;;  %v4757_v6 = vor.u32 %v2403_v57, %v2402_v30  ;;  %v1841_v33 = vor.u32 %v4705_v17, %v1837_v23  ;;  %v3765_v58 = vld [vmem:[#allocation9 + $0x98] sm:$0xff] }
 0x1a7   : > { %v1682_v1 = vsel %vm1664_vm11, %v1655_v22, %v1673_v39  ;;  %vm1715_vm8 = vcmp.ge.s32.totalorder %v1706_v7, 0  ;;  %vm1724_vm9 = vcmp.lt.s32.totalorder %v1706_v7, 128  ;;  %2107 = vmatpush.bf16.msrb.mxu3 %v3765_v58  ;;  %v3793_v58 = vld [vmem:[#allocation9 + $0x178] sm:$0xff] }
 0x1a8   : > { %v1758_v2 = vsel %vm1731_vm12, %v1682_v1, 0.0  ;;  %v1628_v8 = vpop.f32.mrf.mxu0  ;;  %v4755_v4 = vsel %vm1404_vm6, %v4657_v56, %v4748_v62  ;;  %v4766_v56 = vsel %vm1132_vm4, %v4667_v29, %v4757_v6  ;;  %vm1733_vm11 = vmand %vm1715_vm8, %vm1724_vm9  ;;  %vm1716_vm12 = vcmp.ge.s32.totalorder %v4693_v36, 0 }
 0x1a9   : > { %v1767_v14 = vpack.c.bf16 %v1758_v2, %v1758_v2  ;;  %v1643_v35 = vadd.f32 %v1628_v8, %v4585_v28 }
 0x1ab   : > { %v4768_v41 = vunpack.c.l.b16 %v1767_v14  ;;  %v1656_v16 = vadd.f32 %v4605_v9, %v1643_v35  ;;  %2108 = vmatpush.bf16.msrb.mxu3 %v3764_v51  ;;  %v3763_v35 = vld [vmem:[#allocation9 + $0x88] sm:$0xff]  ;;  %v3792_v51 = vld [vmem:[#allocation9 + $0x170] sm:$0xff] }
 0x1ad   : > { %v4773_v28 = vpack.c.b16 %v4768_v41, %v4722_v12  ;;  %vm1665_vm15 = vcmp.ge.f32.partialorder %v1656_v16, 0.0  ;;  %v1674_v37 = vmul.f32 0.2, %v1656_v16 }
 0x1af   : > { %v1683_v0 = vsel %vm1665_vm15, %v1656_v16, %v1674_v37  ;;  %2014 = vmatmul.bf16.vlgmr.msra.gmra.mxu2 %v4773_v28  ;;  %2593 = vmatmul.bf16.vlgmr.msra.gmra.mxu0 %v2526_v49  ;;  %v4777_v29 = vshll.u32 %v4773_v28, 16  ;;  %v1847_v60 = vshrl.u32 %v4773_v28, 16  ;;  %v2527_v48 = vrot.slane %v4773_v28, 3  ;;  %vm1734_vm15 = vmand %vm1716_vm12, %vm1725_vm13  ;;  %v3762_v37 = vld [vmem:[#allocation9 + $0x80] sm:$0xff] }
 0x1b0   : > { %v1759_v38 = vsel %vm1732_vm7, %v1683_v0, 0.0  ;;  %v1630_v53 = vpop.f32.mrf.mxu0  ;;  %v2287_v52 = vrot.slane %v4773_v28, 2  ;;  %v2045_v54 = vrot.slane %v4773_v28, 1  ;;  %2109 = vmatpush.bf16.msrb.mxu3 %v3763_v35 }
 0x1b1   : > { %v1768_v31 = vpack.c.bf16 %v1759_v38, %v1759_v38  ;;  %v1644_v49 = vadd.f32 %v1630_v53, %v4588_v47  ;;  %v1845_v13 = vrot.slane %v4777_v29, 1  ;;  %v2528_v20 = vsel %vm1278_vm5, %v2525_v43, %v2527_v48 }
 0x1b2   : > { %v2164_v22 = vrot.slane %v1847_v60, 1  ;;  %v2165_v45 = vrot.slane %v4777_v29, 2  ;;  %v4799_v17 = vsel %vm1006_vm3, %v2285_v19, %v2287_v52  ;;  %v4806_v47 = vsel %vm734_vm1, %v2043_v11, %v2045_v54 }
 0x1b3   : > { %v4808_v23 = vunpack.c.l.b16 %v1768_v31  ;;  %v1657_v43 = vadd.f32 %v4605_v9, %v1644_v49  ;;  %v1846_v32 = vsel %vm478_vm0, %v1841_v33, %v1845_v13  ;;  %v2646_v46 = vrot.slane %v1847_v60, 3 }
 0x1b4   : > { %1928 = vmatmul.bf16.gmra.mxu1 %v1846_v32  ;;  %v4812_v27 = vor.u32 %v2165_v45, %v2164_v22  ;;  %v2647_v19 = vrot.slane %v4777_v29, 4  ;;  %v2406_v50 = vrot.slane %v1847_v60, 2  ;;  %v2407_v11 = vrot.slane %v4777_v29, 3  ;;  %2110 = vmatpush.bf16.msrb.mxu3 %v3762_v37 }
 0x1b5   : > { %vm1666_vm10 = vcmp.ge.f32.partialorder %v1657_v43, 0.0  ;;  %v1675_v26 = vmul.f32 0.2, %v1657_v43  ;;  %v2766_v63 = vpack.c.b16 %v4808_v23, %v4768_v41 }
 0x1b6   : > { %v4823_v39 = vsel %vm860_vm2, %v4728_v44, %v4812_v27  ;;  %v4825_v34 = vor.u32 %v2647_v19, %v2646_v46  ;;  %v4827_v30 = vor.u32 %v2407_v11, %v2406_v50  ;;  %v3809_v46 = vld [vmem:[#allocation9 + $0x1f8] sm:$0xff] }
 0x1b7   : > { %v1684_v3 = vsel %vm1666_vm10, %v1657_v43, %v1675_v26  ;;  %v3817_v50 = vld [vmem:[#allocation9 + $0x238] sm:$0xff]  ;;  %2710 = vmatpush.bf16.msra.mxu1 %v3809_v46 }
 0x1b8   : > { %v1760_v57 = vsel %vm1733_vm11, %v1684_v3, 0.0  ;;  %v1633_v1 = vpop.f32.mrf.mxu0  ;;  %v4832_v2 = vsel %vm1404_vm6, %v4748_v62, %v4825_v34  ;;  %v4838_v44 = vsel %vm1132_vm4, %v4757_v6, %v4827_v30  ;;  %2820 = vmatpush.bf16.msra.mxu2 %v3817_v50  ;;  %v3805_v46 = vld [vmem:[#allocation9 + $0x1d8] sm:$0xff]  ;;  %v3802_v50 = vld [vmem:[#allocation9 + $0x1c0] sm:$0xff] }
 0x1b9   : > { %v1769_v8 = vpack.c.bf16 %v1760_v57, %v1760_v57  ;;  %v1645_v14 = vadd.f32 %v1633_v1, %v4594_v5 }
 0x1bb   : > { %v4842_v15 = vunpack.c.l.b16 %v1769_v8  ;;  %v1658_v7 = vadd.f32 %v4605_v9, %v1645_v14  ;;  %v1849_v9 = vor.u32 %v1847_v60, %v1845_v13 }
 0x1bd   : > { %v4847_v62 = vpack.c.b16 %v4842_v15, %v4808_v23  ;;  %vm1667_vm14 = vcmp.ge.f32.partialorder %v1658_v7, 0.0  ;;  %v1676_v5 = vmul.f32 0.2, %v1658_v7 }
 0x1bf   : > { %v1685_v6 = vsel %vm1667_vm14, %v1658_v7, %v1676_v5  ;;  %2019 = vmatmul.bf16.gmra.mxu2 %v4847_v62  ;;  %2598 = vmatmul.bf16.gmra.mxu0 %v2528_v20  ;;  %v1851_v36 = vshll.u32 %v4847_v62, 16  ;;  %v2529_v10 = vrot.slane %v4847_v62, 3  ;;  %v1855_v16 = vshrl.u32 %v4847_v62, 16 }
 0x1c0   : > { %v1761_v0 = vsel %vm1734_vm15, %v1685_v6, 0.0  ;;  %v1635_v29 = vpop.f32.mrf.mxu0  ;;  %v2289_v18 = vrot.slane %v4847_v62, 2  ;;  %v2047_v38 = vrot.slane %v4847_v62, 1 }
 0x1c1   : > { %v1770_v53 = vpack.c.bf16 %v1761_v0, %v1761_v0  ;;  %v1853_v33 = vrot.slane %v1851_v36, 1  ;;  %v2530_v31 = vsel %vm1278_vm5, %v2527_v48, %v2529_v10  ;;  %v2168_v49 = vrot.slane %v1855_v16, 1 }
 0x1c2   : > { %v2169_v20 = vrot.slane %v1851_v36, 2  ;;  %v4861_v22 = vsel %vm1006_vm3, %v2287_v52, %v2289_v18  ;;  %v4866_v60 = vsel %vm734_vm1, %v2045_v54, %v2047_v38  ;;  %v2650_v13 = vrot.slane %v1855_v16, 3 }
 0x1c3   : > { %v4868_v45 = vunpack.c.l.b16 %v1770_v53  ;;  %v1854_v43 = vsel %vm478_vm0, %v1849_v9, %v1853_v33  ;;  %v2651_v32 = vrot.slane %v1851_v36, 4  ;;  %v2410_v19 = vrot.slane %v1855_v16, 2  ;;  %v3807_v9 = vld [vmem:[#allocation9 + $0x1e8] sm:$0xff] }
 0x1c4   : > { %1933 = vmatmul.bf16.vlgmr.msra.gmra.mxu3 %v1854_v43  ;;  %2238 = vmatmul.bf16.vlgmr.msrb.gmra.mxu1 %v4746_v61  ;;  %v2170_v48 = vor.u32 %v2169_v20, %v2168_v49  ;;  %v2411_v52 = vrot.slane %v1851_v36, 3  ;;  %v3808_v61 = vld [vmem:[#allocation9 + $0x1f0] sm:$0xff]  ;;  %v1857_v35 = vor.u32 %v1855_v16, %v1853_v33 }
 0x1c5   : > { %v1826_v28 = vpack.c.b16 %v4868_v45, %v4868_v45  ;;  %v2652_v54 = vor.u32 %v2651_v32, %v2650_v13  ;;  %v2767_v26 = vpack.c.b16 %v4868_v45, %v4842_v15  ;;  %2470 = vmatpush.bf16.msra.mxu3 %v3793_v58  ;;  %2711 = vmatpush.bf16.msra.mxu1 %v3808_v61  ;;  %v3791_v58 = vld [vmem:[#allocation9 + $0x168] sm:$0xff] }
 0x1c6   : > { %v4878_v11 = vsel %vm860_vm2, %v4812_v27, %v2170_v48  ;;  %v2412_v3 = vor.u32 %v2411_v52, %v2410_v19  ;;  %v3804_v19 = vld [vmem:[#allocation9 + $0x1d0] sm:$0xff]  ;;  %v3790_v52 = vld [vmem:[#allocation9 + $0x160] sm:$0xff]  ;;  %v3811_v61 = vld [vmem:[#allocation9 + $0x208] sm:$0xff] }
 0x1c7   : > { %v1859_v57 = vshll.u32 %v1826_v28, 16  ;;  %v2531_v1 = vrot.slane %v1826_v28, 3  ;;  %v2172_v8 = vshrl.u32 %v1826_v28, 16  ;;  %v2291_v14 = vrot.slane %v1826_v28, 2 }
 0x1c8   : > { %v2049_v7 = vrot.slane %v1826_v28, 1  ;;  %v4882_v62 = vsel %vm1404_vm6, %v4825_v34, %v2652_v54  ;;  %v4886_v27 = vsel %vm1132_vm4, %v4827_v30, %v2412_v3  ;;  %v3813_v28 = vld [vmem:[#allocation9 + $0x218] sm:$0xff] }
 0x1c9   : > { %v1861_v5 = vrot.slane %v1859_v57, 1  ;;  %v2532_v6 = vsel %vm1278_vm5, %v2529_v10, %v2531_v1  ;;  %v2174_v36 = vrot.slane %v2172_v8, 1  ;;  %v2175_v37 = vrot.slane %v1859_v57, 2  ;;  %2471 = vmatpush.bf16.msra.mxu3 %v3792_v51  ;;  %2712 = vmatpush.bf16.msra.mxu1 %v3807_v9  ;;  %v3788_v51 = vld [vmem:[#allocation9 + $0x150] sm:$0xff] }
 0x1ca   : > { %v2292_v0 = vsel %vm1006_vm3, %v2289_v18, %v2291_v14  ;;  %v4891_v16 = vsel %vm734_vm1, %v2047_v38, %v2049_v7  ;;  %v2654_v29 = vrot.slane %v2172_v8, 3  ;;  %v2655_v34 = vrot.slane %v1859_v57, 4  ;;  %v3806_v18 = vld [vmem:[#allocation9 + $0x1e0] sm:$0xff]  ;;  %v3816_v38 = vld [vmem:[#allocation9 + $0x230] sm:$0xff] }
 0x1cb   : > { %v1862_v53 = vsel %vm478_vm0, %v1857_v35, %v1861_v5  ;;  %v2176_v33 = vor.u32 %v2175_v37, %v2174_v36  ;;  %v2414_v30 = vrot.slane %v2172_v8, 2  ;;  %v2415_v49 = vrot.slane %v1859_v57, 3  ;;  %2821 = vmatpush.bf16.msra.mxu2 %v3816_v38 }
 0x1cc   : > { %v2656_v20 = vor.u32 %v2655_v34, %v2654_v29 }
 0x1cd   : > { %v2177_v10 = vsel %vm860_vm2, %v2170_v48, %v2176_v33  ;;  %v2416_v13 = vor.u32 %v2415_v49, %v2414_v30  ;;  %2713 = vmatpush.bf16.msra.mxu1 %v3806_v18  ;;  %v3815_v48 = vld [vmem:[#allocation9 + $0x228] sm:$0xff]  ;;  %2472 = vmatpush.bf16.msra.mxu3 %v3791_v58 }
 0x1ce   : > { %v2657_v43 = vsel %vm1404_vm6, %v2652_v54, %v2656_v20  ;;  %v3812_v54 = vld [vmem:[#allocation9 + $0x210] sm:$0xff] }
 0x1cf   : > { %2353 = vmatmul.bf16.vlgmr.msrb.gmra.mxu2 %v4719_v55  ;;  %2603 = vmatmul.bf16.gmra.mxu0 %v2530_v31  ;;  %v4898_v32 = vsel %vm1132_vm4, %v2412_v3, %v2416_v13  ;;  %v3814_v55 = vld [vmem:[#allocation9 + $0x220] sm:$0xff]  ;;  %v3803_v31 = vld [vmem:[#allocation9 + $0x1c8] sm:$0xff] }
 0x1d0   : > { %2822 = vmatpush.bf16.msra.mxu2 %v3815_v48  ;;  %v3810_v3 = vld [vmem:[#allocation9 + $0x200] sm:$0xff] }
 0x1d1   : > { %2714 = vmatpush.bf16.msra.mxu1 %v3805_v46  ;;  %2473 = vmatpush.bf16.msra.mxu3 %v3790_v52 }
 0x1d4   : > { %1938 = vmatmul.bf16.gmra.mxu3 %v1862_v53  ;;  %2243 = vmatmul.bf16.gmra.mxu1 %v4823_v39  ;;  %v3789_v39 = vld [vmem:[#allocation9 + $0x158] sm:$0xff] }
 0x1d5   : > { %2715 = vmatpush.bf16.msra.mxu1 %v3804_v19  ;;  %2823 = vmatpush.bf16.msra.mxu2 %v3814_v55 }
 0x1d6   : > { %2474 = vmatpush.bf16.msra.mxu3 %v3789_v39 }
 0x1d9   : > { %2716 = vmatpush.bf16.msra.mxu1 %v3803_v31  ;;  %2824 = vmatpush.bf16.msra.mxu2 %v3813_v28 }
 0x1da   : > { %2475 = vmatpush.bf16.msra.mxu3 %v3788_v51 }
 0x1dd   : > { %2717 = vmatpush.bf16.msra.mxu1 %v3802_v50  ;;  %2825 = vmatpush.bf16.msra.mxu2 %v3812_v54 }
 0x1df   : > { %2358 = vmatmul.bf16.gmra.mxu2 %v4799_v17  ;;  %2608 = vmatmul.bf16.gmra.mxu0 %v2532_v6  ;;  %v3787_v17 = vld [vmem:[#allocation9 + $0x148] sm:$0xff] }
 0x1e0   : > { %2476 = vmatpush.bf16.msra.mxu3 %v3787_v17  ;;  %v4966_v17 = vld [vmem:[%s5059_s5] ss:$0 sm:$0xff] }
 0x1e1   : > { %2826 = vmatpush.bf16.msra.mxu2 %v3811_v61 }
 0x1e4   : > { %2111 = vmatmul.bf16.vlgmr.msrb.gmra.mxu3 %v4733_v25  ;;  %2248 = vmatmul.bf16.gmra.mxu1 %v4878_v11  ;;  %v3786_v25 = vld [vmem:[#allocation9 + $0x140] sm:$0xff] }
 0x1e5   : > { %2827 = vmatpush.bf16.msra.mxu2 %v3810_v3  ;;  %2477 = vmatpush.bf16.msra.mxu3 %v3786_v25 }
 0x1ef   : > { %2363 = vmatmul.bf16.gmra.mxu2 %v4861_v22 }
 0x1f4   : > { %2116 = vmatmul.bf16.gmra.mxu3 %v4806_v47  ;;  %2253 = vmatmul.bf16.gmra.mxu1 %v2177_v10 }
 0x1ff   : > { %2368 = vmatmul.bf16.gmra.mxu2 %v2292_v0 }
 0x204   : > { %2121 = vmatmul.bf16.gmra.mxu3 %v4866_v60  ;;  %2718 = vmatmul.bf16.vlgmr.msra.gmra.mxu1 %v4755_v4 }
 0x20f   : > { %2828 = vmatmul.bf16.vlgmr.msra.gmra.mxu2 %v2764_v24 }
 0x214   : > { %2126 = vmatmul.bf16.gmra.mxu3 %v4891_v16  ;;  %2723 = vmatmul.bf16.gmra.mxu1 %v4832_v2 }
 0x21f   : > { %2833 = vmatmul.bf16.gmra.mxu2 %v2765_v59 }
 0x221   : > { %v1924_v47 = vpop.f32.mrf.mxu1 }
 0x224   : > { %2478 = vmatmul.bf16.vlgmr.msra.gmra.mxu3 %v4766_v56  ;;  %2728 = vmatmul.bf16.gmra.mxu1 %v4882_v62  ;;  %v2005_v62 = vpop.f32.mrf.mxu0 }
 0x229   : > { %v1926_v22 = vpop.f32.mrf.mxu1 }
 0x22c   : > { %v2007_v36 = vpop.f32.mrf.mxu0 }
 0x22d   : > { %v2008_v48 = vadd.f32 %v2007_v36, %v1926_v22 }
 0x22f   : > { %2838 = vmatmul.bf16.gmra.mxu2 %v2766_v63 }
 0x231   : > { %v1929_v21 = vpop.f32.mrf.mxu1 }
 0x232   : > { %v2015_v40 = vpop.f32.mrf.mxu2 }
 0x234   : > { %2483 = vmatmul.bf16.gmra.mxu3 %v4838_v44  ;;  %2733 = vmatmul.bf16.gmra.mxu1 %v2657_v43  ;;  %v2010_v16 = vpop.f32.mrf.mxu0  ;;  %v2006_v43 = vadd.f32 %v2005_v62, %v1924_v47 }
 0x235   : > { %v2011_v51 = vadd.f32 %v2010_v16, %v1929_v21 }
 0x239   : > { %v4925_v12 = vpop.f32.mrf.mxu1 }
 0x23a   : > { %v2017_v24 = vpop.f32.mrf.mxu2 }
 0x23c   : > { %v2012_v30 = vpop.f32.mrf.mxu0 }
 0x23f   : > { %2843 = vmatmul.bf16.gmra.mxu2 %v2767_v26 }
 0x241   : > { %v2239_v41 = vpop.f32.mrf.mxu1 }
 0x242   : > { %v2020_v42 = vpop.f32.mrf.mxu2 }
 0x244   : > { %2488 = vmatmul.bf16.gmra.mxu3 %v4886_v27  ;;  %v2594_v13 = vpop.f32.mrf.mxu0 }
 0x247   : > { %v1934_v59 = vpop.f32.mrf.mxu3 }
 0x248   : > { %v4928_v4 = vadd.f32 %v2015_v40, %v1934_v59 }
 0x249   : > { %v2241_v44 = vpop.f32.mrf.mxu1 }
 0x24a   : > { %v2022_v56 = vpop.f32.mrf.mxu2 }
 0x24c   : > { %v2596_v19 = vpop.f32.mrf.mxu0 }
 0x24f   : > { %v1936_v23 = vpop.f32.mrf.mxu3 }
 0x250   : > { %v4930_v63 = vadd.f32 %v2017_v24, %v1936_v23 }
 0x251   : > { %v2244_v57 = vpop.f32.mrf.mxu1 }
 0x252   : > { %v2354_v2 = vpop.f32.mrf.mxu2 }
 0x254   : > { %2493 = vmatmul.bf16.gmra.mxu3 %v4898_v32  ;;  %v2599_v40 = vpop.f32.mrf.mxu0 }
 0x257   : > { %v1939_v60 = vpop.f32.mrf.mxu3 }
 0x258   : > { %v4933_v15 = vadd.f32 %v2020_v42, %v1939_v60  ;;  %v2013_v60 = vadd.f32 %v2012_v30, %v4925_v12 }
 0x259   : > { %v4937_v14 = vpop.f32.mrf.mxu1 }
 0x25a   : > { %v2356_v45 = vpop.f32.mrf.mxu2 }
 0x25c   : > { %v2601_v16 = vpop.f32.mrf.mxu0 }
 0x25f   : > { %v1941_v26 = vpop.f32.mrf.mxu3 }
 0x260   : > { %v4935_v11 = vadd.f32 %v2022_v56, %v1941_v26 }
 0x261   : > { %v4941_v27 = vpop.f32.mrf.mxu1 }
 0x262   : > { %v2359_v1 = vpop.f32.mrf.mxu2 }
 0x267   : > { %v2112_v8 = vpop.f32.mrf.mxu3 }
 0x268   : > { %v2132_v38 = vadd.f32 %v2112_v8, %v2006_v43 }
 0x269   : > { %v4945_v37 = vpop.f32.mrf.mxu1 }
 0x26a   : > { %v4939_v35 = vpop.f32.mrf.mxu2  ;;  %v2259_v46 = vadd.f32 %v2239_v41, %v2132_v38  ;;  %v2877_v41 = vld [vmem:[%s4366_s28] sm:$0xff] }
 0x26c   : > { %v2374_v55 = vadd.f32 %v2354_v2, %v2259_v46 }
 0x26f   : > { %v2114_v7 = vpop.f32.mrf.mxu3 }
 0x270   : > { %v2133_v52 = vadd.f32 %v2114_v7, %v2008_v48 }
 0x271   : > { %v4949_v34 = vpop.f32.mrf.mxu1 }
 0x272   : > { %v4943_v5 = vpop.f32.mrf.mxu2  ;;  %v2260_v54 = vadd.f32 %v2241_v44, %v2133_v52 }
 0x274   : > { %v2375_v22 = vadd.f32 %v2356_v45, %v2260_v54 }
 0x277   : > { %v2117_v6 = vpop.f32.mrf.mxu3 }
 0x278   : > { %v2134_v25 = vadd.f32 %v2117_v6, %v2011_v51 }
 0x279   : > { %v4955_v49 = vpop.f32.mrf.mxu1 }
 0x27a   : > { %v4947_v0 = vpop.f32.mrf.mxu2  ;;  %v2261_v23 = vadd.f32 %v2244_v57, %v2134_v25 }
 0x27c   : > { %v2376_v62 = vadd.f32 %v2359_v1, %v2261_v23 }
 0x27f   : > { %v2119_v9 = vpop.f32.mrf.mxu3 }
 0x280   : > { %v2135_v7 = vadd.f32 %v2119_v9, %v2013_v60 }
 0x281   : > { %v2719_v18 = vpop.f32.mrf.mxu1 }
 0x282   : > { %v4951_v53 = vpop.f32.mrf.mxu2  ;;  %v2262_v12 = vadd.f32 %v4937_v14, %v2135_v7 }
 0x284   : > { %v2377_v48 = vadd.f32 %v4939_v35, %v2262_v12 }
 0x287   : > { %v2122_v29 = vpop.f32.mrf.mxu3 }
 0x288   : > { %v2136_v46 = vadd.f32 %v2122_v29, %v4928_v4 }
 0x289   : > { %v2721_v31 = vpop.f32.mrf.mxu1 }
 0x28a   : > { %v4957_v20 = vpop.f32.mrf.mxu2  ;;  %v2263_v14 = vadd.f32 %v4941_v27, %v2136_v46  ;;  %v2880_v27 = vld [vmem:[%s4366_s28 + $0x18] sm:$0xff] }
 0x28c   : > { %v2378_v29 = vadd.f32 %v4943_v5, %v2263_v14 }
 0x28f   : > { %v4953_v33 = vpop.f32.mrf.mxu3 }
 0x290   : > { %v2137_v4 = vadd.f32 %v4953_v33, %v4930_v63 }
 0x291   : > { %v2724_v56 = vpop.f32.mrf.mxu1 }
 0x292   : > { %v2829_v32 = vpop.f32.mrf.mxu2 }
 0x297   : > { %v4959_v10 = vpop.f32.mrf.mxu3 }
 0x298   : > { %v2138_v63 = vadd.f32 %v4959_v10, %v4933_v15 }
 0x299   : > { %v2726_v9 = vpop.f32.mrf.mxu1 }
 0x29a   : > { %v2831_v39 = vpop.f32.mrf.mxu2 }
 0x29f   : > { %v4961_v58 = vpop.f32.mrf.mxu3 }
 0x2a0   : > { %v2139_v15 = vadd.f32 %v4961_v58, %v4935_v11 }
 0x2a1   : > { %v2729_v51 = vpop.f32.mrf.mxu1 }
 0x2a2   : > { %v2834_v44 = vpop.f32.mrf.mxu2  ;;  %v2266_v12 = vadd.f32 %v4955_v49, %v2139_v15 }
 0x2a7   : > { %v2479_v28 = vpop.f32.mrf.mxu3 }
 0x2a8   : > { %v2499_v50 = vadd.f32 %v2479_v28, %v2374_v55 }
 0x2a9   : > { %v2731_v23 = vpop.f32.mrf.mxu1 }
 0x2aa   : > { %v2614_v61 = vadd.f32 %v2594_v13, %v2499_v50  ;;  %v2878_v13 = vld [vmem:[%s4366_s28 + $0x8] sm:$0xff] }
 0x2ac   : > { %v2739_v3 = vadd.f32 %v2719_v18, %v2614_v61 }
 0x2ae   : > { %v2849_v47 = vadd.f32 %v2829_v32, %v2739_v3  ;;  %v2836_v32 = vpop.f32.mrf.mxu2 }
 0x2af   : > { %v2481_v24 = vpop.f32.mrf.mxu3 }
 0x2b0   : > { %v2861_v42 = vadd.f32 %v4966_v17, %v2849_v47  ;;  %v2500_v59 = vadd.f32 %v2481_v24, %v2375_v22 }
 0x2b2   : > { %v2869_v21 = vmul.f32 0.1, %v2861_v42  ;;  %v2615_v2 = vadd.f32 %v2596_v19, %v2500_v59 }
 0x2b4   : > { %v2885_v26 = vadd.f32 %v2877_v41, %v2869_v21  ;;  %v2740_v8 = vadd.f32 %v2721_v31, %v2615_v2  ;;  %v2879_v31 = vld [vmem:[%s4366_s28 + $0x10] sm:$0xff] }
 0x2b6   : > { %2893 = vst [vmem:[%s4973_s15] sm:$0xff] %v2885_v26  ;;  %v2850_v45 = vadd.f32 %v2831_v39, %v2740_v8  ;;  %v2604_v39 = vpop.f32.mrf.mxu0  ;;  %v2839_v3 = vpop.f32.mrf.mxu2  ;;  %v2265_v26 = vadd.f32 %v4949_v34, %v2138_v63  ;;  %v2882_v34 = vld [vmem:[%s4366_s28 + $0x28] sm:$0xff] }
 0x2b7   : > { %v2484_v6 = vpop.f32.mrf.mxu3 }
 0x2b8   : > { %v2862_v57 = vadd.f32 %v4966_v17, %v2850_v45  ;;  %v2501_v36 = vadd.f32 %v2484_v6, %v2376_v62  ;;  %v2380_v10 = vadd.f32 %v4951_v53, %v2265_v26  ;;  %v2381_v53 = vadd.f32 %v4957_v20, %v2266_v12 }
 0x2ba   : > { %v2870_v30 = vmul.f32 0.1, %v2862_v57  ;;  %v2616_v43 = vadd.f32 %v2599_v40, %v2501_v36  ;;  %v2264_v40 = vadd.f32 %v4945_v37, %v2137_v4  ;;  %v2881_v37 = vld [vmem:[%s4366_s28 + $0x20] sm:$0xff] }
 0x2bc   : > { %v2886_v18 = vadd.f32 %v2878_v13, %v2870_v30  ;;  %v2741_v38 = vadd.f32 %v2724_v56, %v2616_v43  ;;  %v2379_v33 = vadd.f32 %v4947_v0, %v2264_v40  ;;  %v2734_v13 = vpop.f32.mrf.mxu1 }
 0x2be   : > { %2894 = vst [vmem:[%s4973_s15 + $0x8] sm:$0xff] %v2886_v18  ;;  %v2851_v1 = vadd.f32 %v2834_v44, %v2741_v38  ;;  %v2606_v41 = vpop.f32.mrf.mxu0  ;;  %v2841_v60 = vpop.f32.mrf.mxu2 }
 0x2bf   : > { %v2486_v19 = vpop.f32.mrf.mxu3 }
 0x2c0   : > { %v2863_v52 = vadd.f32 %v4966_v17, %v2851_v1  ;;  %v2502_v55 = vadd.f32 %v2486_v19, %v2377_v48  ;;  %v2883_v48 = vld [vmem:[%s4366_s28 + $0x30] sm:$0xff] }
 0x2c2   : > { %v2871_v28 = vmul.f32 0.1, %v2863_v52  ;;  %v2617_v50 = vadd.f32 %v2601_v16, %v2502_v55 }
 0x2c4   : > { %v2887_v54 = vadd.f32 %v2879_v31, %v2871_v28  ;;  %v2742_v61 = vadd.f32 %v2726_v9, %v2617_v50  ;;  %v2736_v52 = vpop.f32.mrf.mxu1  ;;  %v2884_v50 = vld [vmem:[%s4366_s28 + $0x38] sm:$0xff] }
 0x2c6   : > { %2895 = vst [vmem:[%s4973_s15 + $0x10] sm:$0xff] %v2887_v54  ;;  %v2852_v35 = vadd.f32 %v2836_v32, %v2742_v61  ;;  %v2609_v6 = vpop.f32.mrf.mxu0  ;;  %v2844_v9 = vpop.f32.mrf.mxu2 }
 0x2c7   : > { %v2489_v25 = vpop.f32.mrf.mxu3 }
 0x2c8   : > { %v2864_v47 = vadd.f32 %v4966_v17, %v2852_v35  ;;  %v2503_v22 = vadd.f32 %v2489_v25, %v2378_v29 }
 0x2ca   : > { %v2872_v24 = vmul.f32 0.1, %v2864_v47  ;;  %v2618_v42 = vadd.f32 %v2604_v39, %v2503_v22 }
 0x2cc   : > { %v2888_v59 = vadd.f32 %v2880_v27, %v2872_v24  ;;  %v2743_v56 = vadd.f32 %v2729_v51, %v2618_v42 }
 0x2ce   : > { %2896 = vst [vmem:[%s4973_s15 + $0x18] sm:$0xff] %v2888_v59  ;;  %v2853_v5 = vadd.f32 %v2839_v3, %v2743_v56  ;;  %v2611_v1 = vpop.f32.mrf.mxu0  ;;  %v2846_v31 = vpop.f32.mrf.mxu2 }
 0x2cf   : > { %v2491_v21 = vpop.f32.mrf.mxu3 }
 0x2d0   : > { %v2865_v2 = vadd.f32 %v4966_v17, %v2853_v5  ;;  %v2504_v44 = vadd.f32 %v2491_v21, %v2379_v33 }
 0x2d2   : > { %v2873_v8 = vmul.f32 0.1, %v2865_v2  ;;  %v2619_v7 = vadd.f32 %v2606_v41, %v2504_v44 }
 0x2d4   : > { %v2889_v45 = vadd.f32 %v2881_v37, %v2873_v8  ;;  %v2744_v62 = vadd.f32 %v2731_v23, %v2619_v7 }
 0x2d6   : > { %2897 = vst [vmem:[%s4973_s15 + $0x20] sm:$0xff] %v2889_v45  ;;  %v2854_v0 = vadd.f32 %v2841_v60, %v2744_v62 }
 0x2d7   : > { %v2494_v57 = vpop.f32.mrf.mxu3 }
 0x2d8   : > { %v2866_v36 = vadd.f32 %v4966_v17, %v2854_v0  ;;  %v2505_v16 = vadd.f32 %v2494_v57, %v2380_v10 }
 0x2da   : > { %v2874_v30 = vmul.f32 0.1, %v2866_v36  ;;  %v2620_v43 = vadd.f32 %v2609_v6, %v2505_v16 }
 0x2dc   : > { %v2890_v11 = vadd.f32 %v2882_v34, %v2874_v30  ;;  %v2745_v58 = vadd.f32 %v2734_v13, %v2620_v43 }
 0x2de   : > { %2898 = vst [vmem:[%s4973_s15 + $0x28] sm:$0xff] %v2890_v11  ;;  %v2855_v18 = vadd.f32 %v2844_v9, %v2745_v58 }
 0x2df   : > { %v2496_v38 = vpop.f32.mrf.mxu3 }
 0x2e0   : > { %v2867_v32 = vadd.f32 %v4966_v17, %v2855_v18  ;;  %v2506_v46 = vadd.f32 %v2496_v38, %v2381_v53 }
 0x2e2   : > { %v2875_v49 = vmul.f32 0.1, %v2867_v32  ;;  %v2621_v19 = vadd.f32 %v2611_v1, %v2506_v46 }
 0x2e4   : > { %v2891_v55 = vadd.f32 %v2883_v48, %v2875_v49  ;;  %v2746_v20 = vadd.f32 %v2736_v52, %v2621_v19 }
 0x2e6   : > { %2899 = vst [vmem:[%s4973_s15 + $0x30] sm:$0xff] %v2891_v55  ;;  %v2856_v14 = vadd.f32 %v2846_v31, %v2746_v20 }
 0x2e8   : > { %v2868_v28 = vadd.f32 %v4966_v17, %v2856_v14 }
 0x2ea   : > { %v2876_v39 = vmul.f32 0.1, %v2868_v28 }
 0x2ec   : > { %v2892_v54 = vadd.f32 %v2884_v50, %v2876_v39 }
 0x2ee   : > { %2900 = vst [vmem:[%s4973_s15 + $0x38] sm:$0xff] %v2892_v54 }
 0x2ef   : > { %4135 = shalt.err (!%p4132_p0)
}
 0x2f0   : > { %s4210_s2 = smov 128   ;;  %s4211_s28 = smov 8  }
 0x2f1   : > { %3904 = dma.vmem_to_hbm [thread:$0]  (%p4326_p7), %s2917_s19, 1024, %s2919_s7, %s2902_s24, %s4210_s2, %s4210_s2, %s4211_s28  }
 0x2f2 PF: > { %s2933_s29 = sand.u32 1, %s4182_s21   ;;  %p3921_p3 = pnand %p3056_p11, %p4292_p6 }
 0x2f3   : > { %s2934_s20 = scalar_lea.sflag [#allocation5], %s2933_s29 }
 0x2f4   : > { %p3922_p5 = pneg %p3921_p3 }
 0x2f6   : > { %4177 = dma.done.wait (%p3922_p5), %s2934_s20, 1024  }
 0x2f7   : > { %4179 = vsyncadd (%p3922_p5), %s2934_s20, 4294966272  ;;  %s26_s26 = sadd.s32 1, %s4202_s26   ;;  %s5078_s14 = sld [smem:[#allocation17_spill]] }
 0x2f8   : > { %p23_p9 = scmp.ge.s32.totalorder %s26_s26, 4   ;;  %s5079_s23 = sld [smem:[#allocation19_spill]] }
 0x2f9   : > { %s5080_s8 = sld [smem:[#allocation18_spill]]  ;;  %s5081_s21 = smov %s4186_s22 }
 0x2fa   : > { %s5083_s24 = smov %s4198_s25 }
 0x2fb   :  { %25 = sbr.rel (!%p23_p9) target bundleno = 13 (0xd), region = 126 }
 0x2fd   : > { %s5082_s22 = smov %s5078_s14 }
 0x2ff   : > { %s5084_s25 = smov %s5080_s8 }
 0x300   :  { %2940 = vsyncpa [#allocation4], 1 }
 0x301   :  { %2942 = vsyncpa [#allocation4 + $0x1], 1 }
 0x302   :  { %2943 = vsyncpa [#allocation7], 1 }
 0x303   :  { %2945 = vsyncpa [#allocation7 + $0x1], 1 }
 0x304   :  { %2946 = vsyncpa [#allocation10], 1 }
 0x305   :  { %2947 = vsyncpa [#allocation5], 1 }
 0x306   :  { %2949 = vsyncpa [#allocation5 + $0x1], 1 }

</bundles_post_ra>
